<compile_context>
chip_gen: v7x
topology: tpu7x:2x2x1
jax: 0.10.0
libtpu: 0.0.40
codegen_flags: <defaults>
</compile_context>

<pallas_src>
import functools

import jax
import jax.numpy as jnp
from jax.experimental import pallas as pl
from jax.experimental.pallas import tpu as pltpu


def _round_up(x, m):
    return (x + m - 1) // m * m


def _make_kernel(branch_meta, n_branches, seq_tile, inv_seq_len):
    """branch_meta: static tuple of (tile_offset, n_tiles, seq_len) per branch."""

    def kernel(*refs):
        x_refs = refs[:n_branches]
        w1_ref, b1_ref, w2_ref, b2_ref, o_ref, acc_ref = refs[n_branches:]
        s = pl.program_id(1)

        @pl.when(s == 0)
        def _():
            acc_ref[...] = jnp.zeros_like(acc_ref)

        # Pooled-sum accumulation.  Exactly one branch is "active" per seq step;
        # inactive branches are parked (their pl.when bodies are skipped and their
        # block indices do not change, so no DMA is issued for them).
        for j in range(n_branches):
            off, nt, s_len = branch_meta[j]
            x_ref = x_refs[j]
            rem = s_len % seq_tile  # static: length of the (possibly) ragged tile

            if rem == 0:
                @pl.when((s >= off) & (s < off + nt))
                def _(x_ref=x_ref):
                    acc_ref[...] += jnp.sum(x_ref[...], axis=1, dtype=jnp.float32)
            else:
                if nt > 1:
                    @pl.when((s >= off) & (s < off + nt - 1))
                    def _(x_ref=x_ref):
                        acc_ref[...] += jnp.sum(x_ref[...], axis=1,
                                                dtype=jnp.float32)

                # Boundary tile: rows >= rem are out-of-bounds garbage -> mask.
                @pl.when(s == off + nt - 1)
                def _(x_ref=x_ref, rem=rem):
                    x = x_ref[...]
                    pos = jax.lax.broadcasted_iota(jnp.int32, x.shape, 1)
                    x = jnp.where(pos < rem, x, jnp.zeros_like(x))
                    acc_ref[...] += jnp.sum(x, axis=1, dtype=jnp.float32)

        # Epilogue: once per batch tile (last seq step only) — mean + MLP head.
        @pl.when(s == pl.num_programs(1) - 1)
        def _():
            pooled = acc_ref[...] * inv_seq_len                       # (TB, E) f32
            # TODO(synk): nn.Dropout is identity in eval mode; training-mode dropout
            # (PRNG masking) is not implemented.
            h = jnp.dot(pooled, w1_ref[...], preferred_element_type=jnp.float32)
            h = jnp.maximum(h + b1_ref[...], 0.0)                     # (TB, H)
            out = jnp.dot(h, w2_ref[...], preferred_element_type=jnp.float32)
            o_ref[...] = (out + b2_ref[...]).astype(o_ref.dtype)

    return kernel


def stacked_modular_pool(branches, w1, b1, w2, b2, *,
                         batch_tile=128,
                         seq_tile=None,
                         x_vmem_budget=24 * 1024 * 1024):
    """branches: dict (or sequence) of (B, S_i, E) arrays (concatenated along seq
    like torch.cat(list(x.values()), dim=1)).  w1:(E,H) b1:(H,) w2:(H,O) b2:(O,)."""
    # TODO(synk): only pool_type='avg' (module default) is implemented; 'max' and
    # 'attention' pooling variants are not.
    if isinstance(branches, dict):
        branches = list(branches.values())
    branches = list(branches)
    n = len(branches)
    assert n >= 1
    B, _, E = branches[0].shape
    for xb in branches:
        assert xb.shape[0] == B and xb.shape[2] == E, "branch shape mismatch"
    H = w1.shape[1]
    O = w2.shape[1]
    assert w1.shape == (E, H) and b1.shape == (H,)
    assert w2.shape == (H, O) and b2.shape == (O,)

    seq_lens = [int(xb.shape[1]) for xb in branches]
    S_total = sum(seq_lens)

    itemsize = jnp.dtype(branches[0].dtype).itemsize
    sub = {4: 8, 2: 16, 1: 32}.get(itemsize, 8)          # sublane granularity

    TB = min(_round_up(B, 8), batch_tile)

    # Largest seq tile such that all branches' double-buffered (TB, TS, E) windows
    # fit in a conservative VMEM budget (only one branch streams at a time, but
    # every input gets its own double-buffered window).
    if seq_tile is None:
        e_lanes = _round_up(E, 128)                      # lane-padded VMEM footprint
        max_ts = x_vmem_budget // (2 * n * TB * e_lanes * itemsize)
        TS = max(sub, max_ts // sub * sub)
        TS = min(TS, _round_up(max(seq_lens), sub))
    else:
        TS = seq_tile
        assert TS % sub == 0, "seq_tile must be a multiple of the sublane size"

    # Flattened seq-tile grid axis: each branch owns a contiguous range of tiles.
    branch_meta = []
    off = 0
    for s_len in seq_lens:
        nt = pl.cdiv(s_len, TS)
        branch_meta.append((off, nt, s_len))
        off += nt
    total_seq_tiles = off
    batch_tiles = pl.cdiv(B, TB)

    w1f = w1.astype(jnp.float32)
    b1f = b1.astype(jnp.float32).reshape(1, H)
    w2f = w2.astype(jnp.float32)
    b2f = b2.astype(jnp.float32).reshape(1, O)

    kernel = _make_kernel(tuple(branch_meta), n, TS, 1.0 / S_total)

    def make_x_spec(off, nt):
        def idx(b, s):
            # Walk this branch's tiles while active, park on a fixed tile otherwise
            # (unchanged block index between consecutive steps -> no re-DMA).
            rel = jnp.minimum(jnp.maximum(s - off, 0), nt - 1)
            return (b, rel, 0)
        return pl.BlockSpec((TB, TS, E), idx)

    in_specs = [make_x_spec(off, nt) for (off, nt, _) in branch_meta]
    in_specs += [
        # MLP params: constant block index -> resident across the whole grid.
        pl.BlockSpec((E, H), lambda b, s: (0, 0)),
        pl.BlockSpec((1, H), lambda b, s: (0, 0)),
        pl.BlockSpec((H, O), lambda b, s: (0, 0)),
        pl.BlockSpec((1, O), lambda b, s: (0, 0)),
    ]

    cost = pl.CostEstimate(
        flops=B * S_total * E                              # pooled-sum accumulation
              + 2 * B * (E * H + H * O),                   # MLP head
        transcendentals=0,
        bytes_accessed=(sum(xb.size for xb in branches) * itemsize
                        + (w1f.size + b1f.size + w2f.size + b2f.size) * 4
                        + B * O * 4),
    )

    out = pl.pallas_call(
        kernel,
        out_shape=jax.ShapeDtypeStruct((B, O), jnp.float32),
        grid_spec=pltpu.PrefetchScalarGridSpec(
            num_scalar_prefetch=0,
            grid=(batch_tiles, total_seq_tiles),
            in_specs=in_specs,
            out_specs=pl.BlockSpec((TB, O), lambda b, s: (b, 0)),
            scratch_shapes=[pltpu.VMEM((TB, E), jnp.float32)],
        ),
        compiler_params=pltpu.CompilerParams(
            dimension_semantics=("parallel", "arbitrary"),
            vmem_limit_bytes=48 * 1024 * 1024,
        ),
        cost_estimate=cost,
    )(*branches, w1f, b1f, w2f, b2f)

    return out


def _reference(branches, w1, b1, w2, b2):
    if isinstance(branches, dict):
        branches = list(branches.values())
    x = jnp.concatenate(list(branches), axis=1)           # (B, S_total, E)
    pooled = x.astype(jnp.float32).mean(axis=1)            # (B, E)
    h = jnp.maximum(pooled @ w1 + b1, 0.0)                  # (B, H)
    return h @ w2 + b2                                      # (B, O)


if __name__ == "__main__":
    # Small shapes: 3 modality branches, batch=2, embed_dim=32, hidden=64, output=16.
    # Seq lengths chosen so that (with seq_tile=16) one branch is parked, one needs a
    # masked boundary tile, and one spans multiple tiles — exercising all kernel paths.
    B, E, H, O = 2, 32, 64, 16
    seq_lens = {"text": 8, "audio": 20, "video": 40}       # concatenated seq = 68

    key = jax.random.PRNGKey(0)
    keys = jax.random.split(key, len(seq_lens) + 4)

    branches = {}
    for i, (name, s_len) in enumerate(seq_lens.items()):
        branches[name] = jax.random.normal(keys[i], (B, s_len, E), dtype=jnp.float32)

    kw1, kb1, kw2, kb2 = keys[len(seq_lens):]
    w1 = 0.1 * jax.random.normal(kw1, (E, H), dtype=jnp.float32)
    b1 = 0.1 * jax.random.normal(kb1, (H,), dtype=jnp.float32)
    w2 = 0.1 * jax.random.normal(kw2, (H, O), dtype=jnp.float32)
    b2 = 0.1 * jax.random.normal(kb2, (O,), dtype=jnp.float32)

    out = stacked_modular_pool(branches, w1, b1, w2, b2, seq_tile=16)
    out = jax.block_until_ready(out)

    ref = _reference(branches, w1, b1, w2, b2)
    assert out.shape == (B, O), out.shape
    assert jnp.allclose(out, ref, atol=1e-4, rtol=1e-4), "mismatch vs reference"

    print("KERNEL_OK")
</pallas_src>

<mosaic_0001>
module attributes {stable_mosaic.version = 11 : i64} {
  func.func @kernel(%arg0: i32, %arg1: i32, %arg2: memref<8x16x32xf32, #tpu.memory_space<vmem>>, %arg3: memref<8x16x32xf32, #tpu.memory_space<vmem>>, %arg4: memref<8x16x32xf32, #tpu.memory_space<vmem>>, %arg5: memref<32x64xf32, #tpu.memory_space<vmem>>, %arg6: memref<1x64xf32, #tpu.memory_space<vmem>>, %arg7: memref<64x16xf32, #tpu.memory_space<vmem>>, %arg8: memref<1x16xf32, #tpu.memory_space<vmem>>, %arg9: memref<8x16xf32, #tpu.memory_space<vmem>>, %arg10: memref<8x32xf32, #tpu.memory_space<vmem>>) attributes {dimension_semantics = [#tpu.dimension_semantics<parallel>, #tpu.dimension_semantics<arbitrary>], iteration_bounds = array<i64: 1, 6>, scalar_prefetch = 0 : i64, scratch_operands = 1 : i64, tpu.core_type = #tpu.core_type<tc>, window_params = [{transform_indices = @transform_0, window_bounds = array<i64: 8, 16, 32>}, {transform_indices = @transform_1, window_bounds = array<i64: 8, 16, 32>}, {transform_indices = @transform_2, window_bounds = array<i64: 8, 16, 32>}, {pipeline_mode = #tpu.pipeline_mode<synchronous>, transform_indices = @transform_3, window_bounds = array<i64: 32, 64>}, {pipeline_mode = #tpu.pipeline_mode<synchronous>, transform_indices = @transform_4, window_bounds = array<i64: 1, 64>}, {pipeline_mode = #tpu.pipeline_mode<synchronous>, transform_indices = @transform_5, window_bounds = array<i64: 64, 16>}, {pipeline_mode = #tpu.pipeline_mode<synchronous>, transform_indices = @transform_6, window_bounds = array<i64: 1, 16>}, {transform_indices = @transform_7, window_bounds = array<i64: 8, 16>}]} {
    %c0_i32 = arith.constant 0 : i32
    %0 = arith.cmpi eq, %arg1, %c0_i32 : i32
    %1 = arith.extui %0 : i1 to i32
    %c0_i32_0 = arith.constant 0 : i32
    %2 = arith.cmpi ne, %1, %c0_i32_0 : i32
    scf.if %2 {
      %cst = arith.constant 0.000000e+00 : f32
      %25 = vector.broadcast %cst : f32 to vector<8x32xf32>
      %c0 = arith.constant 0 : index
      %c0_11 = arith.constant 0 : index
      %26 = vector.load %arg10[%c0, %c0_11] : memref<8x32xf32, #tpu.memory_space<vmem>>, vector<8x32xf32>
      tpu.vector_store %arg10[%c0, %c0_11], %25 {strides = array<i32>} : memref<8x32xf32, #tpu.memory_space<vmem>>, vector<8x32xf32>,
    } else {
    }
    %c0_i32_1 = arith.constant 0 : i32
    %3 = arith.cmpi eq, %arg1, %c0_i32_1 : i32
    %4 = arith.extui %3 : i1 to i32
    %c0_i32_2 = arith.constant 0 : i32
    %5 = arith.cmpi ne, %4, %c0_i32_2 : i32
    scf.if %5 {
      %c0 = arith.constant 0 : index
      %c0_11 = arith.constant 0 : index
      %c0_12 = arith.constant 0 : index
      %25 = vector.load %arg2[%c0, %c0_11, %c0_12] : memref<8x16x32xf32, #tpu.memory_space<vmem>>, vector<8x16x32xf32>
      %26 = tpu.iota {dimensions = array<i32: 1>} : vector<8x16x32xi32>
      %c8_i32 = arith.constant 8 : i32
      %27 = vector.broadcast %c8_i32 : i32 to vector<8x16x32xi32>
      %28 = arith.cmpi slt, %26, %27 : vector<8x16x32xi32>
      %cst = arith.constant 0.000000e+00 : f32
      %29 = vector.broadcast %cst : f32 to vector<8x16x32xf32>
      %30 = arith.select %28, %25, %29 : vector<8x16x32xi1>, vector<8x16x32xf32>
      %c0_13 = arith.constant 0 : index
      %c0_14 = arith.constant 0 : index
      %31 = vector.load %arg10[%c0_13, %c0_14] : memref<8x32xf32, #tpu.memory_space<vmem>>, vector<8x32xf32>
      %cst_15 = arith.constant dense<0.000000e+00> : vector<8x32xf32>
      %32 = vector.multi_reduction <add>, %30, %cst_15 [1] : vector<8x16x32xf32> to vector<8x32xf32>
      %33 = arith.addf %31, %32 : vector<8x32xf32>
      %c0_16 = arith.constant 0 : index
      %c0_17 = arith.constant 0 : index
      %34 = vector.load %arg10[%c0_16, %c0_17] : memref<8x32xf32, #tpu.memory_space<vmem>>, vector<8x32xf32>
      tpu.vector_store %arg10[%c0_16, %c0_17], %33 {strides = array<i32>} : memref<8x32xf32, #tpu.memory_space<vmem>>, vector<8x32xf32>,
    } else {
    }
    %c1_i32 = arith.constant 1 : i32
    %6 = arith.cmpi sge, %arg1, %c1_i32 : i32
    %c2_i32 = arith.constant 2 : i32
    %7 = arith.cmpi slt, %arg1, %c2_i32 : i32
    %8 = arith.andi %6, %7 : i1
    %9 = arith.extui %8 : i1 to i32
    %c0_i32_3 = arith.constant 0 : i32
    %10 = arith.cmpi ne, %9, %c0_i32_3 : i32
    scf.if %10 {
      %c0 = arith.constant 0 : index
      %c0_11 = arith.constant 0 : index
      %25 = vector.load %arg10[%c0, %c0_11] : memref<8x32xf32, #tpu.memory_space<vmem>>, vector<8x32xf32>
      %c0_12 = arith.constant 0 : index
      %c0_13 = arith.constant 0 : index
      %c0_14 = arith.constant 0 : index
      %26 = vector.load %arg3[%c0_12, %c0_13, %c0_14] : memref<8x16x32xf32, #tpu.memory_space<vmem>>, vector<8x16x32xf32>
      %cst = arith.constant dense<0.000000e+00> : vector<8x32xf32>
      %27 = vector.multi_reduction <add>, %26, %cst [1] : vector<8x16x32xf32> to vector<8x32xf32>
      %28 = arith.addf %25, %27 : vector<8x32xf32>
      %c0_15 = arith.constant 0 : index
      %c0_16 = arith.constant 0 : index
      %29 = vector.load %arg10[%c0_15, %c0_16] : memref<8x32xf32, #tpu.memory_space<vmem>>, vector<8x32xf32>
      tpu.vector_store %arg10[%c0_15, %c0_16], %28 {strides = array<i32>} : memref<8x32xf32, #tpu.memory_space<vmem>>, vector<8x32xf32>,
    } else {
    }
    %c2_i32_4 = arith.constant 2 : i32
    %11 = arith.cmpi eq, %arg1, %c2_i32_4 : i32
    %12 = arith.extui %11 : i1 to i32
    %c0_i32_5 = arith.constant 0 : i32
    %13 = arith.cmpi ne, %12, %c0_i32_5 : i32
    scf.if %13 {
      %c0 = arith.constant 0 : index
      %c0_11 = arith.constant 0 : index
      %c0_12 = arith.constant 0 : index
      %25 = vector.load %arg3[%c0, %c0_11, %c0_12] : memref<8x16x32xf32, #tpu.memory_space<vmem>>, vector<8x16x32xf32>
      %26 = tpu.iota {dimensions = array<i32: 1>} : vector<8x16x32xi32>
      %c4_i32 = arith.constant 4 : i32
      %27 = vector.broadcast %c4_i32 : i32 to vector<8x16x32xi32>
      %28 = arith.cmpi slt, %26, %27 : vector<8x16x32xi32>
      %cst = arith.constant 0.000000e+00 : f32
      %29 = vector.broadcast %cst : f32 to vector<8x16x32xf32>
      %30 = arith.select %28, %25, %29 : vector<8x16x32xi1>, vector<8x16x32xf32>
      %c0_13 = arith.constant 0 : index
      %c0_14 = arith.constant 0 : index
      %31 = vector.load %arg10[%c0_13, %c0_14] : memref<8x32xf32, #tpu.memory_space<vmem>>, vector<8x32xf32>
      %cst_15 = arith.constant dense<0.000000e+00> : vector<8x32xf32>
      %32 = vector.multi_reduction <add>, %30, %cst_15 [1] : vector<8x16x32xf32> to vector<8x32xf32>
      %33 = arith.addf %31, %32 : vector<8x32xf32>
      %c0_16 = arith.constant 0 : index
      %c0_17 = arith.constant 0 : index
      %34 = vector.load %arg10[%c0_16, %c0_17] : memref<8x32xf32, #tpu.memory_space<vmem>>, vector<8x32xf32>
      tpu.vector_store %arg10[%c0_16, %c0_17], %33 {strides = array<i32>} : memref<8x32xf32, #tpu.memory_space<vmem>>, vector<8x32xf32>,
    } else {
    }
    %c3_i32 = arith.constant 3 : i32
    %14 = arith.cmpi sge, %arg1, %c3_i32 : i32
    %c5_i32 = arith.constant 5 : i32
    %15 = arith.cmpi slt, %arg1, %c5_i32 : i32
    %16 = arith.andi %14, %15 : i1
    %17 = arith.extui %16 : i1 to i32
    %c0_i32_6 = arith.constant 0 : i32
    %18 = arith.cmpi ne, %17, %c0_i32_6 : i32
    scf.if %18 {
      %c0 = arith.constant 0 : index
      %c0_11 = arith.constant 0 : index
      %25 = vector.load %arg10[%c0, %c0_11] : memref<8x32xf32, #tpu.memory_space<vmem>>, vector<8x32xf32>
      %c0_12 = arith.constant 0 : index
      %c0_13 = arith.constant 0 : index
      %c0_14 = arith.constant 0 : index
      %26 = vector.load %arg4[%c0_12, %c0_13, %c0_14] : memref<8x16x32xf32, #tpu.memory_space<vmem>>, vector<8x16x32xf32>
      %cst = arith.constant dense<0.000000e+00> : vector<8x32xf32>
      %27 = vector.multi_reduction <add>, %26, %cst [1] : vector<8x16x32xf32> to vector<8x32xf32>
      %28 = arith.addf %25, %27 : vector<8x32xf32>
      %c0_15 = arith.constant 0 : index
      %c0_16 = arith.constant 0 : index
      %29 = vector.load %arg10[%c0_15, %c0_16] : memref<8x32xf32, #tpu.memory_space<vmem>>, vector<8x32xf32>
      tpu.vector_store %arg10[%c0_15, %c0_16], %28 {strides = array<i32>} : memref<8x32xf32, #tpu.memory_space<vmem>>, vector<8x32xf32>,
    } else {
    }
    %c5_i32_7 = arith.constant 5 : i32
    %19 = arith.cmpi eq, %arg1, %c5_i32_7 : i32
    %20 = arith.extui %19 : i1 to i32
    %c0_i32_8 = arith.constant 0 : i32
    %21 = arith.cmpi ne, %20, %c0_i32_8 : i32
    scf.if %21 {
      %c0 = arith.constant 0 : index
      %c0_11 = arith.constant 0 : index
      %c0_12 = arith.constant 0 : index
      %25 = vector.load %arg4[%c0, %c0_11, %c0_12] : memref<8x16x32xf32, #tpu.memory_space<vmem>>, vector<8x16x32xf32>
      %26 = tpu.iota {dimensions = array<i32: 1>} : vector<8x16x32xi32>
      %c8_i32 = arith.constant 8 : i32
      %27 = vector.broadcast %c8_i32 : i32 to vector<8x16x32xi32>
      %28 = arith.cmpi slt, %26, %27 : vector<8x16x32xi32>
      %cst = arith.constant 0.000000e+00 : f32
      %29 = vector.broadcast %cst : f32 to vector<8x16x32xf32>
      %30 = arith.select %28, %25, %29 : vector<8x16x32xi1>, vector<8x16x32xf32>
      %c0_13 = arith.constant 0 : index
      %c0_14 = arith.constant 0 : index
      %31 = vector.load %arg10[%c0_13, %c0_14] : memref<8x32xf32, #tpu.memory_space<vmem>>, vector<8x32xf32>
      %cst_15 = arith.constant dense<0.000000e+00> : vector<8x32xf32>
      %32 = vector.multi_reduction <add>, %30, %cst_15 [1] : vector<8x16x32xf32> to vector<8x32xf32>
      %33 = arith.addf %31, %32 : vector<8x32xf32>
      %c0_16 = arith.constant 0 : index
      %c0_17 = arith.constant 0 : index
      %34 = vector.load %arg10[%c0_16, %c0_17] : memref<8x32xf32, #tpu.memory_space<vmem>>, vector<8x32xf32>
      tpu.vector_store %arg10[%c0_16, %c0_17], %33 {strides = array<i32>} : memref<8x32xf32, #tpu.memory_space<vmem>>, vector<8x32xf32>,
    } else {
    }
    %c5_i32_9 = arith.constant 5 : i32
    %22 = arith.cmpi eq, %arg1, %c5_i32_9 : i32
    %23 = arith.extui %22 : i1 to i32
    %c0_i32_10 = arith.constant 0 : i32
    %24 = arith.cmpi ne, %23, %c0_i32_10 : i32
    scf.if %24 {
      %c0 = arith.constant 0 : index
      %c0_11 = arith.constant 0 : index
      %25 = vector.load %arg10[%c0, %c0_11] : memref<8x32xf32, #tpu.memory_space<vmem>>, vector<8x32xf32>
      %cst = arith.constant 0.0147058824 : f32
      %26 = vector.broadcast %cst : f32 to vector<8x32xf32>
      %27 = arith.mulf %25, %26 : vector<8x32xf32>
      %c0_12 = arith.constant 0 : index
      %c0_13 = arith.constant 0 : index
      %28 = vector.load %arg5[%c0_12, %c0_13] : memref<32x64xf32, #tpu.memory_space<vmem>>, vector<32x64xf32>
      %cst_14 = arith.constant dense<0.000000e+00> : vector<8x64xf32>
      %29 = tpu.matmul %27, %28, %cst_14 {dimension_numbers = #tpu.dot_dimension_numbers<[1], [0], [0], [1], [0, 0, 1, 1], [], []>} : vector<8x32xf32>, vector<32x64xf32>, vector<8x64xf32> -> vector<8x64xf32>
      %c0_15 = arith.constant 0 : index
      %c0_16 = arith.constant 0 : index
      %30 = vector.load %arg6[%c0_15, %c0_16] : memref<1x64xf32, #tpu.memory_space<vmem>>, vector<1x64xf32>
      %31 = vector.broadcast %30 : vector<1x64xf32> to vector<8x64xf32>
      %32 = arith.addf %29, %31 : vector<8x64xf32>
      %cst_17 = arith.constant 0.000000e+00 : f32
      %33 = vector.broadcast %cst_17 : f32 to vector<8x64xf32>
      %34 = arith.maximumf %32, %33 : vector<8x64xf32>
      %c0_18 = arith.constant 0 : index
      %c0_19 = arith.constant 0 : index
      %35 = vector.load %arg7[%c0_18, %c0_19] : memref<64x16xf32, #tpu.memory_space<vmem>>, vector<64x16xf32>
      %cst_20 = arith.constant dense<0.000000e+00> : vector<8x16xf32>
      %36 = tpu.matmul %34, %35, %cst_20 {dimension_numbers = #tpu.dot_dimension_numbers<[1], [0], [0], [1], [0, 0, 1, 1], [], []>} : vector<8x64xf32>, vector<64x16xf32>, vector<8x16xf32> -> vector<8x16xf32>
      %c0_21 = arith.constant 0 : index
      %c0_22 = arith.constant 0 : index
      %37 = vector.load %arg8[%c0_21, %c0_22] : memref<1x16xf32, #tpu.memory_space<vmem>>, vector<1x16xf32>
      %38 = vector.broadcast %37 : vector<1x16xf32> to vector<8x16xf32>
      %39 = arith.addf %36, %38 : vector<8x16xf32>
      %c0_23 = arith.constant 0 : index
      %c0_24 = arith.constant 0 : index
      %40 = vector.load %arg9[%c0_23, %c0_24] : memref<8x16xf32, #tpu.memory_space<vmem>>, vector<8x16xf32>
      tpu.vector_store %arg9[%c0_23, %c0_24], %39 {strides = array<i32>} : memref<8x16xf32, #tpu.memory_space<vmem>>, vector<8x16xf32>,
    } else {
    }
    return
  }
  func.func @transform_0(%arg0: i32, %arg1: i32) -> (i32, i32, i32) {
    %c0_i32 = arith.constant 0 : i32
    %0 = arith.subi %arg1, %c0_i32 : i32
    %c0_i32_0 = arith.constant 0 : i32
    %1 = arith.maxsi %0, %c0_i32_0 : i32
    %c0_i32_1 = arith.constant 0 : i32
    %2 = arith.minsi %1, %c0_i32_1 : i32
    %c0_i32_2 = arith.constant 0 : i32
    %c0_i32_3 = arith.constant 0 : i32
    return %arg0, %2, %c0_i32_2 : i32, i32, i32
  }
  func.func @transform_1(%arg0: i32, %arg1: i32) -> (i32, i32, i32) {
    %c1_i32 = arith.constant 1 : i32
    %0 = arith.subi %arg1, %c1_i32 : i32
    %c0_i32 = arith.constant 0 : i32
    %1 = arith.maxsi %0, %c0_i32 : i32
    %c1_i32_0 = arith.constant 1 : i32
    %2 = arith.minsi %1, %c1_i32_0 : i32
    %c0_i32_1 = arith.constant 0 : i32
    %c0_i32_2 = arith.constant 0 : i32
    return %arg0, %2, %c0_i32_1 : i32, i32, i32
  }
  func.func @transform_2(%arg0: i32, %arg1: i32) -> (i32, i32, i32) {
    %c3_i32 = arith.constant 3 : i32
    %0 = arith.subi %arg1, %c3_i32 : i32
    %c0_i32 = arith.constant 0 : i32
    %1 = arith.maxsi %0, %c0_i32 : i32
    %c2_i32 = arith.constant 2 : i32
    %2 = arith.minsi %1, %c2_i32 : i32
    %c0_i32_0 = arith.constant 0 : i32
    %c0_i32_1 = arith.constant 0 : i32
    return %arg0, %2, %c0_i32_0 : i32, i32, i32
  }
  func.func @transform_3(%arg0: i32, %arg1: i32) -> (i32, i32) {
    %c0_i32 = arith.constant 0 : i32
    %c0_i32_0 = arith.constant 0 : i32
    %c0_i32_1 = arith.constant 0 : i32
    return %c0_i32, %c0_i32_0 : i32, i32
  }
  func.func @transform_4(%arg0: i32, %arg1: i32) -> (i32, i32) {
    %c0_i32 = arith.constant 0 : i32
    %c0_i32_0 = arith.constant 0 : i32
    %c0_i32_1 = arith.constant 0 : i32
    return %c0_i32, %c0_i32_0 : i32, i32
  }
  func.func @transform_5(%arg0: i32, %arg1: i32) -> (i32, i32) {
    %c0_i32 = arith.constant 0 : i32
    %c0_i32_0 = arith.constant 0 : i32
    %c0_i32_1 = arith.constant 0 : i32
    return %c0_i32, %c0_i32_0 : i32, i32
  }
  func.func @transform_6(%arg0: i32, %arg1: i32) -> (i32, i32) {
    %c0_i32 = arith.constant 0 : i32
    %c0_i32_0 = arith.constant 0 : i32
    %c0_i32_1 = arith.constant 0 : i32
    return %c0_i32, %c0_i32_0 : i32, i32
  }
  func.func @transform_7(%arg0: i32, %arg1: i32) -> (i32, i32) {
    %c0_i32 = arith.constant 0 : i32
    %c0_i32_0 = arith.constant 0 : i32
    return %arg0, %c0_i32 : i32, i32
  }
}

</mosaic_0001>

<bundles_post_ra>
// kernel: tpu_custom_call.1
= control target key start
LH: loop header
LB: loop body
LE: loop exit
PB: predicated region body
PF: predicated region fallthrough
CT: control target
= control target key end

     0   :  { %s3613_s0 = inlined_call_operand.vmem [shape: f32[2,8,32], index: 0, kind: input, shape index: {}]   ;;  %s3614_s1 = inlined_call_operand.vmem [shape: f32[2,20,32], index: 1, kind: input, shape index: {}]   ;;  %s3615_s2 = inlined_call_operand.vmem [shape: f32[2,40,32], index: 2, kind: input, shape index: {}]   ;;  %s3616_s3 = inlined_call_operand.vmem [shape: f32[32,64], index: 3, kind: input, shape index: {}]   ;;  %s3617_s4 = inlined_call_operand.vmem [shape: f32[1,64], index: 4, kind: input, shape index: {}]   ;;  %s3618_s5 = inlined_call_operand.vmem [shape: f32[64,16], index: 5, kind: input, shape index: {}]   ;;  %s3619_s6 = inlined_call_operand.vmem [shape: f32[1,16], index: 6, kind: input, shape index: {}]   ;;  %s3620_s7 = inlined_call_operand.hbm [shape: f32[2,16], index: 7, kind: output, shape index: {}]  }
   0x1   :  { %3624 = sst [smem:[#allocation13_spill]] %s3613_s0 }
   0x2   :  { %3625 = sst [smem:[#allocation14_spill]] %s3614_s1 }
   0x3   :  { %12 = vsyncpa [#allocation7], 0  ;;  %s3111_s24 = smov 0   ;;  %s3113_s25 = smov 0  }
   0x4   :  { %s3115_s26 = smov 0   ;;  %s3117_s27 = smov 0  }
   0x5   :  { %s3119_s28 = smov 0   ;;  %s3121_s29 = smov 0  }
   0x6   :  { %s3123_s30 = smov 0  }
   0x7 LB: > { %3626 = sst [smem:[#allocation9_spill]] %s2954_s27  ;;  %s27_s9 = sadd.s32 1, %s2962_s29  ;;  %s2966_s30 = sphi %s3123_s30, %s18_s30   ;;  %s2962_s29 = sphi %s3121_s29, %s3656_s29   ;;  %s2958_s28 = sphi %s3119_s28, %s3655_s28   ;;  %s2954_s27 = sphi %s3117_s27, %s3654_s27   ;;  %s2950_s26 = sphi %s3115_s26, %s3653_s26   ;;  %s2946_s25 = sphi %s3113_s25, %s3658_s25   ;;  %s2942_s24 = sphi %s3111_s24, %s3657_s24  }
   0x8   : > { %3627 = sst [smem:[#allocation10_spill]] %s2962_s29  ;;  %p28_p0 = scmp.ge.s32.totalorder %s27_s9, 6 }
   0x9   : > { %p55_p1 = scmp.eq.s32.totalorder %s2966_s30, 0  ;;  %s2313_s10 = sadd.s32 4294967295, %s2962_s29 }
   0xa   : > { %s85_s11 = sadd.s32 1, %s2954_s27  ;;  %s3660_s9 = smov (%p28_p0, %s27_s9), 0 }
   0xb   : > { %3628 = sst [smem:[#allocation11_spill]] %s3660_s9  ;;  %p71_p2 = scmp.gt.s32.totalorder %s2313_s10, 0 }
   0xc   : > { %p2314_p3 = scmp.lt.s32.totalorder %s2313_s10, 1  ;;  %s2319_s12 = sadd.s32 4294967295, %s3660_s9 }
   0xd   : > { %p92_p4 = scmp.ne.s32.totalorder %s2954_s27, %s2950_s26  ;;  %s3662_s10 = smov (!%p71_p2, %s2313_s10), 0 }
   0xe   : > { %p76_p5 = scmp.gt.s32.totalorder %s2319_s12, 0  ;;  %p2320_p6 = scmp.lt.s32.totalorder %s2319_s12, 1 }
   0xf   : > { %s3664_s10 = smov (!%p2314_p3, %s3662_s10), 1  ;;  %p3160_p7 = por %p92_p4, %p55_p1 }
  0x10   : > { %s3666_s12 = smov (!%p76_p5, %s2319_s12), 0  ;;  %s2325_s14 = sadd.s32 4294967293, %s2962_s29 }
  0x11   : > { %s3668_s12 = smov (!%p2320_p6, %s3666_s12), 1  ;;  %p109_p8 = scmp.gt.s32.totalorder %s2325_s14, 0 }
  0x12   : > { %p2326_p9 = scmp.lt.s32.totalorder %s2325_s14, 2  ;;  %s81_s15 = ssub.s32 %s3664_s10, %s3668_s12 }
  0x13   : > { %s2331_s16 = sadd.s32 4294967293, %s3660_s9  ;;  %p83_p10 = scmp.eq.s32.totalorder %s81_s15, 0 }
  0x14   : > { %p114_p11 = scmp.gt.s32.totalorder %s2331_s16, 0  ;;  %s3670_s14 = smov (!%p109_p8, %s2325_s14), 0 }
  0x15   : > { %s3168_s17 = scalar_select %p83_p10, %s2954_s27, %s85_s11  }
  0x16   : > { %s3672_s14 = smov (!%p2326_p9, %s3670_s14), 2  ;;  %p2332_p12 = scmp.lt.s32.totalorder %s2331_s16, 2 }
  0x17   : > { %3630 = sst [smem:[#allocation12_spill]] %s3168_s17  ;;  %p130_p13 = scmp.ne.s32.totalorder %s2946_s25, %s2942_s24 }
  0x18   : > { %s115_s18 = scalar_select %p114_p11, %s2331_s16, 0 }
  0x19   : > { %p3176_p0 = por %p130_p13, %p55_p1  ;;  %s123_s21 = sadd.s32 1, %s2946_s25 }
  0x1a   : > { %s3674_s18 = smov (!%p2332_p12, %s115_s18), 2  ;;  %p2338_p3 = scmp.ge.s32.totalorder %s2966_s30, 6 }
  0x1b   : > { %s119_s20 = ssub.s32 %s3672_s14, %s3674_s18 }
  0x1c   : > { %p121_p2 = scmp.eq.s32.totalorder %s119_s20, 0  ;;  %278 = sbr.rel (%p2338_p3) target bundleno = 178 (0xb2), region = 32 }
  0x1e   : > { %s3183_s22 = scalar_select %p121_p2, %s2946_s25, %s123_s21  }
  0x23   : > { %281 = sbr.rel (!%p55_p1) target bundleno = 56 (0x38), region = 36  ;;  %s2968_s23 = smov (%p55_p1), [#allocation3]  }
  0x24   : > { %s3632_s0 = sld [smem:[#allocation13_spill]] (%p55_p1)  ;;  %s2976_s16 = smov (%p55_p1), 0  }
  0x25   : > { %s2980_s8 = smov (%p55_p1), 0  }
  0x2a   : > { %s2972_s15 = smov %s3632_s0  }
  0x2b LB: >> { %v388_v0 = vld [vmem:[%s2974_s15] sm:$0xff]  ;;  %v390_v1 = vld [vmem:[%s2974_s15 + $0x8] sm:$0xff]  ;;  %s395_s18 = sadd.s32 1, %s2978_s16  ;;  %s3633_s0 = sld [smem:[#allocation13_spill]]  ;;  %s2982_s8 = sphi %s2980_s8, %s381_s8   ;;  %s2978_s16 = sphi %s2976_s16, %s2977_s16   ;;  %s2974_s15 = sphi %s2972_s15, %s405_s15   ;;  %s2970_s23 = sphi %s2968_s23, %s406_s23  }
  0x2c   : >> { %389 = vst [vmem:[%s2970_s23] sm:$0xff] %v388_v0  ;;  %391 = vst [vmem:[%s2970_s23 + $0x10] sm:$0xff] %v390_v1  ;;  %p397_p4 = scmp.ge.s32.totalorder %s395_s18, 1  ;;  %s381_s8 = sadd.s32 1, %s2982_s8  }
  0x2d   : >> { %p380_p1 = scmp.ge.s32.totalorder %s381_s8, 1 }
  0x2e   : >> { %s3676_s18 = smov (%p397_p4, %s395_s18), 0 }
  0x2f   : >> { %s2351_s20 = sshll.u32 %s3676_s18, 4  ;;  %s2353_s21 = sshll.u32 %s3676_s18, 5 }
  0x30   : >> { %s406_s23 = scalar_lea.vmem [#allocation3], %s2353_s21   ;;  %s2977_s16 = smov %s3676_s18  }
  0x31   : >> { %s405_s15 = scalar_lea.vmem %s3633_s0, %s2351_s20   ;;  %383 = sbr.rel (!%p380_p1) target bundleno = 43 (0x2b), region = 341 }
  0x38 PF: > { %447 = sbr.rel (!%p3160_p7) target bundleno = 117 (0x75), region = 88  ;;  %s449_s12 = sand.u32 (%p3160_p7), 1, %s2954_s27  }
  0x39   : > { %s2370_s16 = sshll.u32 (%p3160_p7), %s3664_s10, 1  ;;  %s2363_s29 = sshll.u32 (%p3160_p7), %s449_s12, 7 }
  0x3a   : > { %s461_s9 = ssub.s32 (%p3160_p7), 3, %s2370_s16  ;;  %s2450_s20 = sshll.u32 (%p3160_p7), %s3664_s10, 4 }
  0x3b   : > { %p462_p5 = scmp.lt.s32.totalorder (%p3160_p7), %s461_s9, 2  ;;  %s3634_s1 = sld [smem:[#allocation14_spill]] (%p3160_p7) }
  0x3c   : > { %s3207_s13 = scalar_lea.vmem (%p3160_p7), [#allocation4], %s2363_s29  }
  0x3f   : > { %s3678_s9 = smov (!%p462_p5, %s461_s9), 2 }
  0x40   : > { %s2371_s18 = sshll.u32 %s3678_s9, 8 }
  0x41   : > { %s3204_s8 = scalar_lea.vmem %s3634_s1, %s2450_s20   ;;  %p2374_p6 = scmp.eq.s32.totalorder %s2371_s18, 0 }
  0x42   : > { %s3210_s21 = sshrl.u32 (!%p2374_p6), %s3678_s9, 1 }
  0x43   : > { %472 = sbr.rel (%p2374_p6) target bundleno = 117 (0x75), region = 92  ;;  %p2375_p7 = scmp.le.s32.totalorder (!%p2374_p6), %s3210_s21, 0 }
  0x4a   : > { %2168 = sbr.rel (%p2375_p7) target bundleno = 93 (0x5d), region = 357  ;;  %s3635_s10 = smov (!%p2375_p7), %s3207_s13 }
  0x4b   : > { %s3636_s11 = smov (!%p2375_p7), %s3204_s8  ;;  %s3219_s12 = smov (!%p2375_p7), 0  }
  0x4c   : > { %s3221_s16 = smov (!%p2375_p7), 0   ;;  %s3223_s29 = smov (!%p2375_p7), 0  }
  0x51 LB: >> { %v602_v2 = vld [vmem:[%s2990_s11] sm:$0xff]  ;;  %v604_v3 = vld [vmem:[%s2990_s11 + $0x8] sm:$0xff]  ;;  %v606_v4 = vld [vmem:[%s2990_s11 + $0x18] sm:$0xff]  ;;  %s610_s20 = sadd.s32 1, %s2994_s12  ;;  %s613_s23 = sadd.s32 1, %s2998_s16  ;;  %s3002_s29 = sphi %s3223_s29, %s595_s29   ;;  %s2998_s16 = sphi %s3221_s16, %s3638_s16   ;;  %s2994_s12 = sphi %s3219_s12, %s3637_s12   ;;  %s2990_s11 = sphi %s3636_s11, %s623_s11   ;;  %s2986_s10 = sphi %s3635_s10, %s624_s10  }
  0x52   : >> { %603 = vst [vmem:[%s2986_s10] sm:$0xff] %v602_v2  ;;  %605 = vst [vmem:[%s2986_s10 + $0x8] sm:$0xff] %v604_v3  ;;  %v608_v5 = vld [vmem:[%s2990_s11 + $0x20] sm:$0xff]  ;;  %p611_p8 = scmp.ge.s32.totalorder %s610_s20, %s3210_s21  ;;  %s595_s29 = sadd.s32 1, %s3002_s29  }
  0x53   : >> { %607 = vst [vmem:[%s2986_s10 + $0x10] sm:$0xff] %v606_v4  ;;  %609 = vst [vmem:[%s2986_s10 + $0x18] sm:$0xff] %v608_v5  ;;  %p594_p10 = scmp.ge.s32.totalorder %s595_s29, %s3210_s21 }
  0x54   : >> { %s3680_s20 = smov (%p611_p8, %s610_s20), 0  ;;  %s3682_s23 = smov (!%p611_p8, %s613_s23), %s2998_s16 }
  0x55   : >> { %p615_p9 = scmp.ge.s32.totalorder %s3682_s23, 1  ;;  %s2376_s15 = sshll.u32 %s3680_s20, 4 }
  0x56   : >> { %s3637_s12 = smov %s3680_s20  ;;  %597 = sbr.rel (!%p594_p10) target bundleno = 81 (0x51), region = 363 }
  0x57   : >> { %s3684_s23 = smov (%p615_p9, %s3682_s23), 0 }
  0x58   : >> { %s617_s18 = smul.u32 48, %s3684_s23  ;;  %s2377_s0 = sshll.u32 %s3684_s23, 5 }
  0x59   : >> { %s622_s1 = sadd.s32 %s2377_s0, %s2376_s15  ;;  %s3638_s16 = smov %s3684_s23 }
  0x5a   : >> { %s619_s17 = sadd.s32 %s2376_s15, %s617_s18  ;;  %s624_s10 = scalar_lea.vmem %s3207_s13, %s622_s1 [#allocation4]  }
  0x5b   : >> { %s623_s11 = scalar_lea.vmem %s3204_s8, %s619_s17  }
  0x5d PF: > { %s664_s0 = sand.u32 1, %s3678_s9   ;;  %s2451_s1 = sshll.u32 %s3210_s21, 4 }
  0x5e   : > { %s3250_s17 = scalar_lea.vmem %s3204_s8, %s2451_s1   ;;  %s3253_s15 = scalar_lea.vmem %s3207_s13, %s2451_s1 [#allocation4]  }
  0x5f   : > { %s3257_s18 = sshll.u32 %s664_s0, 1 }
  0x60   : > { %p2390_p11 = scmp.le.s32.totalorder %s3257_s18, 0 }
  0x61   : > { %s3639_s10 = smov (!%p2390_p11), %s3253_s15  ;;  %s3640_s11 = smov (!%p2390_p11), %s3250_s17 }
  0x62   : > { %2202 = sbr.rel (%p2390_p11) target bundleno = 117 (0x75), region = 379  ;;  %s3266_s12 = smov (!%p2390_p11), 0  }
  0x63   : > { %s3268_s16 = smov (!%p2390_p11), 0   ;;  %s3270_s8 = smov (!%p2390_p11), 0  }
  0x69 LB: >> { %v681_v6 = vld [vmem:[%s3010_s11] sm:$0xff]  ;;  %s683_s13 = sadd.s32 1, %s3014_s12  ;;  %s686_s21 = sadd.s32 1, %s3018_s16  ;;  %s3022_s8 = sphi %s3270_s8, %s674_s8   ;;  %s3018_s16 = sphi %s3268_s16, %s3642_s16   ;;  %s3014_s12 = sphi %s3266_s12, %s3641_s12   ;;  %s3010_s11 = sphi %s3640_s11, %s696_s11   ;;  %s3006_s10 = sphi %s3639_s10, %s697_s10  }
  0x6a   : >> { %682 = vst [vmem:[%s3006_s10] sm:$0xff] %v681_v6  ;;  %p684_p12 = scmp.ge.s32.totalorder %s683_s13, %s664_s0  ;;  %s674_s8 = sadd.s32 1, %s3022_s8  }
  0x6b   : >> { %p673_p2 = scmp.ge.s32.totalorder %s674_s8, %s3257_s18 }
  0x6c   : >> { %s3686_s13 = smov (%p684_p12, %s683_s13), 0  ;;  %s3688_s21 = smov (!%p684_p12, %s686_s21), %s3018_s16 }
  0x6d   : >> { %p688_p13 = scmp.ge.s32.totalorder %s3688_s21, 2  ;;  %s2391_s29 = sshll.u32 %s3686_s13, 3 }
  0x6e   : >> { %s3641_s12 = smov %s3686_s13  ;;  %676 = sbr.rel (!%p673_p2) target bundleno = 105 (0x69), region = 385 }
  0x6f   : >> { %s3690_s21 = smov (%p688_p13, %s3688_s21), 0 }
  0x70   : >> { %s690_s20 = smul.u32 24, %s3690_s21  ;;  %s2392_s23 = sshll.u32 %s3690_s21, 4 }
  0x71   : >> { %s695_s1 = sadd.s32 %s2392_s23, %s2391_s29  ;;  %s3642_s16 = smov %s3690_s21 }
  0x72   : >> { %s692_s27 = sadd.s32 %s2391_s29, %s690_s20  ;;  %s697_s10 = scalar_lea.vmem %s3253_s15, %s695_s1 [#allocation4]  }
  0x73   : >> { %s696_s11 = scalar_lea.vmem %s3250_s17, %s692_s27  }
  0x75 PF: > { %703 = sbr.rel (!%p3176_p0) target bundleno = 178 (0xb2), region = 154  ;;  %s705_s27 = sand.u32 (%p3176_p0), 1, %s2946_s25  }
  0x76   : > { %s2401_s29 = sshll.u32 (%p3176_p0), %s3672_s14, 1  ;;  %s2394_s20 = sshll.u32 (%p3176_p0), %s705_s27, 7 }
  0x77   : > { %s717_s23 = ssub.s32 (%p3176_p0), 5, %s2401_s29  ;;  %s2455_s13 = sshll.u32 (%p3176_p0), %s3672_s14, 4 }
  0x78   : > { %p718_p3 = scmp.lt.s32.totalorder (%p3176_p0), %s717_s23, 2  ;;  %s3302_s9 = scalar_lea.vmem (%p3176_p0), %s3615_s2, %s2455_s13  }
  0x79   : > { %s3305_s19 = scalar_lea.vmem (%p3176_p0), [#allocation5], %s2394_s20  }
  0x7c   : > { %s3692_s23 = smov (!%p718_p3, %s717_s23), 2 }
  0x7d   : > { %s2402_s0 = sshll.u32 %s3692_s23, 8 }
  0x7e   : > { %p2405_p0 = scmp.eq.s32.totalorder %s2402_s0, 0 }
  0x7f   : > { %s3308_s17 = sshrl.u32 (!%p2405_p0), %s3692_s23, 1 }
  0x80   : > { %728 = sbr.rel (%p2405_p0) target bundleno = 178 (0xb2), region = 158  ;;  %p2406_p4 = scmp.le.s32.totalorder (!%p2405_p0), %s3308_s17, 0 }
  0x87   : > { %2219 = sbr.rel (%p2406_p4) target bundleno = 154 (0x9a), region = 390  ;;  %s3643_s14 = smov (!%p2406_p4), %s3305_s19 }
  0x88   : > { %s3644_s15 = smov (!%p2406_p4), %s3302_s9  ;;  %s3317_s18 = smov (!%p2406_p4), 0  }
  0x89   : > { %s3319_s10 = smov (!%p2406_p4), 0   ;;  %s3321_s11 = smov (!%p2406_p4), 0  }
  0x8e LB: >> { %v858_v7 = vld [vmem:[%s3030_s15] sm:$0xff]  ;;  %v860_v8 = vld [vmem:[%s3030_s15 + $0x8] sm:$0xff]  ;;  %s866_s12 = sadd.s32 1, %s3034_s18  ;;  %v864_v10 = vld [vmem:[%s3030_s15 + $0x30] sm:$0xff]  ;;  %s869_s16 = sadd.s32 1, %s3038_s10  ;;  %s3042_s11 = sphi %s3321_s11, %s851_s11   ;;  %s3038_s10 = sphi %s3319_s10, %s3646_s10   ;;  %s3034_s18 = sphi %s3317_s18, %s3645_s18   ;;  %s3030_s15 = sphi %s3644_s15, %s879_s15   ;;  %s3026_s14 = sphi %s3643_s14, %s880_s14  }
  0x8f   : >> { %v862_v9 = vld [vmem:[%s3030_s15 + $0x28] sm:$0xff]  ;;  %859 = vst [vmem:[%s3026_s14] sm:$0xff] %v858_v7  ;;  %861 = vst [vmem:[%s3026_s14 + $0x8] sm:$0xff] %v860_v8  ;;  %p867_p1 = scmp.ge.s32.totalorder %s866_s12, %s3308_s17  ;;  %s851_s11 = sadd.s32 1, %s3042_s11  }
  0x90   : >> { %863 = vst [vmem:[%s3026_s14 + $0x10] sm:$0xff] %v862_v9  ;;  %865 = vst [vmem:[%s3026_s14 + $0x18] sm:$0xff] %v864_v10  ;;  %p850_p6 = scmp.ge.s32.totalorder %s851_s11, %s3308_s17 }
  0x91   : >> { %s3694_s12 = smov (%p867_p1, %s866_s12), 0  ;;  %s3696_s16 = smov (!%p867_p1, %s869_s16), %s3038_s10 }
  0x92   : >> { %p871_p5 = scmp.ge.s32.totalorder %s3696_s16, 1  ;;  %s2407_s1 = sshll.u32 %s3694_s12, 4 }
  0x93   : >> { %s3645_s18 = smov %s3694_s12  ;;  %853 = sbr.rel (!%p850_p6) target bundleno = 142 (0x8e), region = 396 }
  0x94   : >> { %s3698_s16 = smov (%p871_p5, %s3696_s16), 0 }
  0x95   : >> { %s873_s27 = smul.u32 80, %s3698_s16  ;;  %s2408_s29 = sshll.u32 %s3698_s16, 5 }
  0x96   : >> { %s878_s20 = sadd.s32 %s2408_s29, %s2407_s1  ;;  %s3646_s10 = smov %s3698_s16 }
  0x97   : >> { %s875_s13 = sadd.s32 %s2407_s1, %s873_s27  ;;  %s880_s14 = scalar_lea.vmem %s3305_s19, %s878_s20 [#allocation5]  }
  0x98   : >> { %s879_s15 = scalar_lea.vmem %s3302_s9, %s875_s13  }
  0x9a PF: > { %s920_s21 = sand.u32 1, %s3692_s23   ;;  %s2456_s8 = sshll.u32 %s3308_s17, 4 }
  0x9b   : > { %s3348_s0 = scalar_lea.vmem %s3302_s9, %s2456_s8   ;;  %s3351_s1 = scalar_lea.vmem %s3305_s19, %s2456_s8 [#allocation5]  }
  0x9c   : > { %s3355_s27 = sshll.u32 %s920_s21, 1 }
  0x9d   : > { %p2421_p7 = scmp.le.s32.totalorder %s3355_s27, 0 }
  0x9e   : > { %s3647_s14 = smov (!%p2421_p7), %s3351_s1  ;;  %s3648_s15 = smov (!%p2421_p7), %s3348_s0 }
  0x9f   : > { %2253 = sbr.rel (%p2421_p7) target bundleno = 178 (0xb2), region = 412  ;;  %s3364_s18 = smov (!%p2421_p7), 0  }
  0xa0   : > { %s3366_s10 = smov (!%p2421_p7), 0   ;;  %s3368_s9 = smov (!%p2421_p7), 0  }
  0xa6 LB: >> { %v937_v11 = vld [vmem:[%s3050_s15] sm:$0xff]  ;;  %s939_s19 = sadd.s32 1, %s3054_s18  ;;  %s942_s17 = sadd.s32 1, %s3058_s10  ;;  %s3062_s9 = sphi %s3368_s9, %s930_s9   ;;  %s3058_s10 = sphi %s3366_s10, %s3650_s10   ;;  %s3054_s18 = sphi %s3364_s18, %s3649_s18   ;;  %s3050_s15 = sphi %s3648_s15, %s952_s15   ;;  %s3046_s14 = sphi %s3647_s14, %s953_s14  }
  0xa7   : >> { %938 = vst [vmem:[%s3046_s14] sm:$0xff] %v937_v11  ;;  %p940_p8 = scmp.ge.s32.totalorder %s939_s19, %s920_s21  ;;  %s930_s9 = sadd.s32 1, %s3062_s9  }
  0xa8   : >> { %p929_p10 = scmp.ge.s32.totalorder %s930_s9, %s3355_s27 }
  0xa9   : >> { %s3700_s19 = smov (%p940_p8, %s939_s19), 0  ;;  %s3702_s17 = smov (!%p940_p8, %s942_s17), %s3058_s10 }
  0xaa   : >> { %p944_p9 = scmp.ge.s32.totalorder %s3702_s17, 2  ;;  %s2422_s11 = sshll.u32 %s3700_s19, 3 }
  0xab   : >> { %s3649_s18 = smov %s3700_s19  ;;  %932 = sbr.rel (!%p929_p10) target bundleno = 166 (0xa6), region = 418 }
  0xac   : >> { %s3704_s17 = smov (%p944_p9, %s3702_s17), 0 }
  0xad   : >> { %s946_s12 = smul.u32 40, %s3704_s17  ;;  %s2423_s16 = sshll.u32 %s3704_s17, 4 }
  0xae   : >> { %s951_s29 = sadd.s32 %s2423_s16, %s2422_s11  ;;  %s3650_s10 = smov %s3704_s17 }
  0xaf   : >> { %s948_s20 = sadd.s32 %s2422_s11, %s946_s12  ;;  %s953_s14 = scalar_lea.vmem %s3351_s1, %s951_s29 [#allocation5]  }
  0xb0   : >> { %s952_s15 = scalar_lea.vmem %s3348_s0, %s948_s20  }
  0xb2 PF: > { %p2425_p11 = scmp.ge.s32.totalorder %s2966_s30, 1  ;;  %p958_p12 = scmp.lt.s32.totalorder %s2966_s30, 7 }
  0xb4   : > { %p959_p13 = pnand %p2425_p11, %p958_p12 }
  0xb5   : > { %s972_s13 = sand.u32 (!%p959_p13), 1, %s2950_s26   ;;  %s979_s8 = sand.u32 (!%p959_p13), 1, %s2942_s24  }
  0xb6   : > { %962 = sbr.rel (%p959_p13) target bundleno = 815 (0x32f), region = 220  ;;  %s2427_s19 = sshll.u32 (!%p959_p13), %s972_s13, 7 }
  0xb7   : > { %s2428_s11 = sshll.u32 (!%p959_p13), %s979_s8, 7  ;;  %s3394_s17 = scalar_lea.vmem (!%p959_p13), [#allocation4], %s2427_s19 }
  0xb8   : > { %s3396_s9 = scalar_lea.vmem (!%p959_p13), [#allocation5], %s2428_s11  ;;  %p2429_p2 = scmp.ne.s32.totalorder (!%p959_p13), %s2958_s28, 0 }
  0xbd   : > { %1055 = sbr.rel (%p2429_p2) target bundleno = 213 (0xd5), region = 236  ;;  %vm1056_vm0 = vcmask (!%p2429_p2), 261120   ;;  %v1058_v12 = vld [vmem:[#allocation3] sm:$0xff] (!%p2429_p2)  ;;  %v1060_v13 = vld [vmem:[#allocation3 + $0x10] sm:$0xff] (!%p2429_p2)  ;;  %v3064_v15 = vmov (!%p2429_p2), 0.0   ;;  %vm1176_vm1 = vcmask (!%p2429_p2), 1041409  }
  0xbe   : > { %v1062_v14 = vld [vmem:[#allocation3 + $0x20] sm:$0xff] (!%p2429_p2)  ;;  %1057 = vst.msk [vmem:[#allocation2] sm:$0xff] (!%p2429_p2), %vm1056_vm0, %v3064_v15  ;;  %v1064_v16 = vld [vmem:[#allocation3 + $0x30] sm:$0xff] (!%p2429_p2)  ;;  %v1096_v19 = vsel (!%p2429_p2), %vm1056_vm0, %v1058_v12, 0.0  ;;  %v1105_v20 = vsel (!%p2429_p2), %vm1056_vm0, %v1060_v13, 0.0  ;;  %vm1178_vm2 = vcmask (!%p2429_p2), 1042434  }
  0xbf   : > { %v1066_v17 = vld [vmem:[#allocation3 + $0x40] sm:$0xff] (!%p2429_p2)  ;;  %v1068_v18 = vld [vmem:[#allocation3 + $0x50] sm:$0xff] (!%p2429_p2)  ;;  %v1114_v21 = vsel (!%p2429_p2), %vm1056_vm0, %v1062_v14, 0.0  ;;  %v1099_v24 = vrot.slane (!%p2429_p2), %v1096_v19, 4  ;;  %v1108_v25 = vrot.slane (!%p2429_p2), %v1105_v20, 4  ;;  %v1123_v27 = vsel (!%p2429_p2), %vm1056_vm0, %v1064_v16, 0.0 }
  0xc0   : > { %v1070_v22 = vld [vmem:[#allocation3 + $0x60] sm:$0xff] (!%p2429_p2)  ;;  %v1072_v23 = vld [vmem:[#allocation3 + $0x70] sm:$0xff] (!%p2429_p2)  ;;  %v1117_v26 = vrot.slane (!%p2429_p2), %v1114_v21, 4  ;;  %v1126_v28 = vrot.slane (!%p2429_p2), %v1123_v27, 4  ;;  %v1132_v29 = vsel (!%p2429_p2), %vm1056_vm0, %v1066_v17, 0.0  ;;  %v1141_v30 = vsel (!%p2429_p2), %vm1056_vm0, %v1068_v18, 0.0 }
  0xc1   : > { %v1150_v31 = vsel (!%p2429_p2), %vm1056_vm0, %v1070_v22, 0.0  ;;  %v1100_v32 = vadd.f32 (!%p2429_p2), %v1099_v24, %v1096_v19  ;;  %v1109_v33 = vadd.f32 (!%p2429_p2), %v1108_v25, %v1105_v20  ;;  %v1135_v35 = vrot.slane (!%p2429_p2), %v1132_v29, 4 }
  0xc2   : > { %v1118_v34 = vadd.f32 (!%p2429_p2), %v1117_v26, %v1114_v21  ;;  %v1127_v36 = vadd.f32 (!%p2429_p2), %v1126_v28, %v1123_v27  ;;  %v1144_v37 = vrot.slane (!%p2429_p2), %v1141_v30, 4  ;;  %v1153_v38 = vrot.slane (!%p2429_p2), %v1150_v31, 4 }
  0xc3   : > { %v1159_v39 = vsel (!%p2429_p2), %vm1056_vm0, %v1072_v23, 0.0  ;;  %v1101_v40 = vrot.slane (!%p2429_p2), %v1100_v32, 2  ;;  %v1110_v41 = vrot.slane (!%p2429_p2), %v1109_v33, 2  ;;  %v1136_v43 = vadd.f32 (!%p2429_p2), %v1135_v35, %v1132_v29 }
  0xc4   : > { %v1119_v42 = vrot.slane %v1118_v34, 2  ;;  %v1128_v44 = vrot.slane %v1127_v36, 2  ;;  %v1145_v45 = vadd.f32 %v1144_v37, %v1141_v30  ;;  %v1154_v46 = vadd.f32 %v1153_v38, %v1150_v31 }
  0xc5   : > { %v1162_v47 = vrot.slane %v1159_v39, 4  ;;  %v1102_v48 = vadd.f32 %v1101_v40, %v1100_v32  ;;  %v1111_v49 = vadd.f32 %v1110_v41, %v1109_v33  ;;  %v1137_v51 = vrot.slane %v1136_v43, 2  ;;  %v1095_v17 = vld [vmem:[#allocation2] sm:$0xff] }
  0xc6   : > { %v1120_v50 = vadd.f32 %v1119_v42, %v1118_v34  ;;  %v1129_v52 = vadd.f32 %v1128_v44, %v1127_v36  ;;  %v1146_v53 = vrot.slane %v1145_v45, 2  ;;  %v1155_v54 = vrot.slane %v1154_v46, 2 }
  0xc7   : > { %v1163_v55 = vadd.f32 %v1162_v47, %v1159_v39  ;;  %v1103_v56 = vrot.slane %v1102_v48, 1  ;;  %v1112_v57 = vrot.slane %v1111_v49, 1  ;;  %v1138_v59 = vadd.f32 %v1137_v51, %v1136_v43 }
  0xc8   : > { %v1121_v58 = vrot.slane %v1120_v50, 1  ;;  %v1130_v60 = vrot.slane %v1129_v52, 1  ;;  %v1147_v61 = vadd.f32 %v1146_v53, %v1145_v45  ;;  %v1156_v62 = vadd.f32 %v1155_v54, %v1154_v46 }
  0xc9   : > { %v1164_v63 = vrot.slane %v1163_v55, 2  ;;  %v1104_v0 = vadd.f32 %v1103_v56, %v1102_v48  ;;  %v1113_v1 = vadd.f32 %v1112_v57, %v1111_v49  ;;  %v1139_v3 = vrot.slane %v1138_v59, 1 }
  0xca   : > { %v1122_v2 = vadd.f32 %v1121_v58, %v1120_v50  ;;  %v1131_v4 = vadd.f32 %v1130_v60, %v1129_v52  ;;  %v1148_v5 = vrot.slane %v1147_v61, 1  ;;  %v1157_v6 = vrot.slane %v1156_v62, 1 }
  0xcb   : > { %v1165_v7 = vadd.f32 %v1164_v63, %v1163_v55  ;;  %v1140_v8 = vadd.f32 %v1139_v3, %v1138_v59  ;;  %v1177_v9 = vsel %vm1176_vm1, %v1113_v1, %v1104_v0  ;;  %vm1180_vm3 = vcmask 1043459  }
  0xcc   : > { %v1149_v10 = vadd.f32 %v1148_v5, %v1147_v61  ;;  %v1158_v11 = vadd.f32 %v1157_v6, %v1156_v62  ;;  %v1179_v13 = vsel %vm1178_vm2, %v1122_v2, %v1177_v9  ;;  %vm1182_vm4 = vcmask 1044484  }
  0xcd   : > { %v1166_v12 = vrot.slane %v1165_v7, 1  ;;  %v1181_v14 = vsel %vm1180_vm3, %v1131_v4, %v1179_v13  ;;  %vm1184_vm5 = vcmask 1045509   ;;  %vm1186_vm6 = vcmask 1046534  }
  0xce   : > { %v1183_v16 = vsel %vm1182_vm4, %v1140_v8, %v1181_v14  ;;  %vm1188_vm7 = vcmask 1047559  }
  0xcf   : > { %v1167_v15 = vadd.f32 %v1166_v12, %v1165_v7  ;;  %v1185_v18 = vsel %vm1184_vm5, %v1149_v10, %v1183_v16 }
  0xd0   : > { %v1187_v19 = vsel %vm1186_vm6, %v1158_v11, %v1185_v18 }
  0xd1   : > { %v1189_v20 = vsel %vm1188_vm7, %v1167_v15, %v1187_v19 }
  0xd2   : > { %v1191_v21 = vadd.f32 %v1189_v20, %v1095_v17 }
  0xd4   : > { %1192 = vst.msk [vmem:[#allocation2] sm:$0xff] %vm1056_vm0, %v1191_v21 }
  0xd5 PF: > { %p1193_p3 = scmp.ge.s32.totalorder %s2958_s28, 1  ;;  %p1194_p0 = scmp.lt.s32.totalorder %s2958_s28, 2 }
  0xd7   : > { %p1195_p4 = pnand %p1194_p0, %p1193_p3 }
  0xd8   : > { %v1200_v22 = vld [vmem:[%s3394_s17] sm:$0xff] (!%p1195_p4)  ;;  %v1201_v23 = vld [vmem:[%s3394_s17 + $0x8] sm:$0xff] (!%p1195_p4)  ;;  %vm1216_vm8 = vcmask (!%p1195_p4), 261120   ;;  %v1202_v24 = vld [vmem:[%s3394_s17 + $0x10] sm:$0xff] (!%p1195_p4)  ;;  %vm1297_vm9 = vcmask (!%p1195_p4), 1041409   ;;  %vm1299_vm10 = vcmask (!%p1195_p4), 1042434  }
  0xd9   : > { %1198 = sbr.rel (%p1195_p4) target bundleno = 248 (0xf8), region = 240  ;;  %v1203_v25 = vld [vmem:[%s3394_s17 + $0x18] sm:$0xff] (!%p1195_p4)  ;;  %v1204_v26 = vld [vmem:[%s3394_s17 + $0x20] sm:$0xff] (!%p1195_p4)  ;;  %v1217_v27 = vsel (!%p1195_p4), %vm1216_vm8, %v1200_v22, 0.0  ;;  %v1218_v28 = vsel (!%p1195_p4), %vm1216_vm8, %v1201_v23, 0.0  ;;  %v1205_v29 = vld [vmem:[%s3394_s17 + $0x28] sm:$0xff] (!%p1195_p4) }
  0xda   : > { %v1206_v30 = vld [vmem:[%s3394_s17 + $0x30] sm:$0xff] (!%p1195_p4)  ;;  %v1207_v31 = vld [vmem:[%s3394_s17 + $0x38] sm:$0xff] (!%p1195_p4)  ;;  %v1219_v32 = vadd.f32 (!%p1195_p4), %v1218_v28, %v1217_v27  ;;  %v1226_v33 = vsel (!%p1195_p4), %vm1216_vm8, %v1202_v24, 0.0  ;;  %v1227_v34 = vsel (!%p1195_p4), %vm1216_vm8, %v1203_v25, 0.0  ;;  %v1235_v35 = vsel (!%p1195_p4), %vm1216_vm8, %v1204_v26, 0.0  ;;  %v1208_v36 = vld [vmem:[%s3394_s17 + $0x40] sm:$0xff] (!%p1195_p4) }
  0xdb   : > { %v1209_v37 = vld [vmem:[%s3394_s17 + $0x48] sm:$0xff] (!%p1195_p4)  ;;  %v1210_v38 = vld [vmem:[%s3394_s17 + $0x50] sm:$0xff] (!%p1195_p4)  ;;  %v1228_v39 = vadd.f32 (!%p1195_p4), %v1227_v34, %v1226_v33  ;;  %v1236_v40 = vsel (!%p1195_p4), %vm1216_vm8, %v1205_v29, 0.0  ;;  %v1244_v41 = vsel (!%p1195_p4), %vm1216_vm8, %v1206_v30, 0.0  ;;  %v1245_v42 = vsel (!%p1195_p4), %vm1216_vm8, %v1207_v31, 0.0  ;;  %v1211_v43 = vld [vmem:[%s3394_s17 + $0x58] sm:$0xff] (!%p1195_p4) }
  0xdc   : > { %v1212_v44 = vld [vmem:[%s3394_s17 + $0x60] sm:$0xff] (!%p1195_p4)  ;;  %v1213_v45 = vld [vmem:[%s3394_s17 + $0x68] sm:$0xff] (!%p1195_p4)  ;;  %v1220_v46 = vrot.slane (!%p1195_p4), %v1219_v32, 4  ;;  %v1237_v47 = vadd.f32 (!%p1195_p4), %v1236_v40, %v1235_v35  ;;  %v1246_v48 = vadd.f32 (!%p1195_p4), %v1245_v42, %v1244_v41  ;;  %v1253_v49 = vsel (!%p1195_p4), %vm1216_vm8, %v1208_v36, 0.0  ;;  %v1214_v54 = vld [vmem:[%s3394_s17 + $0x70] sm:$0xff] (!%p1195_p4) }
  0xdd   : > { %v1229_v50 = vrot.slane (!%p1195_p4), %v1228_v39, 4  ;;  %v1254_v51 = vsel (!%p1195_p4), %vm1216_vm8, %v1209_v37, 0.0  ;;  %v1262_v52 = vsel (!%p1195_p4), %vm1216_vm8, %v1210_v38, 0.0  ;;  %v1263_v53 = vsel (!%p1195_p4), %vm1216_vm8, %v1211_v43, 0.0  ;;  %v1215_v63 = vld [vmem:[%s3394_s17 + $0x78] sm:$0xff] (!%p1195_p4) }
  0xde   : > { %v1221_v55 = vadd.f32 (!%p1195_p4), %v1220_v46, %v1219_v32  ;;  %v1238_v56 = vrot.slane (!%p1195_p4), %v1237_v47, 4  ;;  %v1247_v57 = vrot.slane (!%p1195_p4), %v1246_v48, 4  ;;  %v1255_v58 = vadd.f32 (!%p1195_p4), %v1254_v51, %v1253_v49  ;;  %v1199_v51 = vld [vmem:[#allocation2] sm:$0xff] (!%p1195_p4) }
  0xdf   : > { %v1230_v59 = vadd.f32 (!%p1195_p4), %v1229_v50, %v1228_v39  ;;  %v1264_v60 = vadd.f32 (!%p1195_p4), %v1263_v53, %v1262_v52  ;;  %v1271_v61 = vsel (!%p1195_p4), %vm1216_vm8, %v1212_v44, 0.0  ;;  %v1272_v62 = vsel (!%p1195_p4), %vm1216_vm8, %v1213_v45, 0.0 }
  0xe0   : > { %v1222_v0 = vrot.slane %v1221_v55, 2  ;;  %v1239_v1 = vadd.f32 %v1238_v56, %v1237_v47  ;;  %v1248_v2 = vadd.f32 %v1247_v57, %v1246_v48  ;;  %v1256_v3 = vrot.slane %v1255_v58, 4 }
  0xe1   : > { %vm1301_vm11 = vcmask 1043459   ;;  %v1231_v4 = vrot.slane %v1230_v59, 2  ;;  %v1265_v5 = vrot.slane %v1264_v60, 4  ;;  %v1273_v6 = vadd.f32 %v1272_v62, %v1271_v61 }
  0xe2   : > { %v1280_v7 = vsel %vm1216_vm8, %v1214_v54, 0.0  ;;  %v1223_v8 = vadd.f32 %v1222_v0, %v1221_v55  ;;  %v1240_v9 = vrot.slane %v1239_v1, 2  ;;  %v1249_v10 = vrot.slane %v1248_v2, 2 }
  0xe3   : > { %v1257_v11 = vadd.f32 %v1256_v3, %v1255_v58  ;;  %v1232_v12 = vadd.f32 %v1231_v4, %v1230_v59  ;;  %v1266_v13 = vadd.f32 %v1265_v5, %v1264_v60  ;;  %v1274_v14 = vrot.slane %v1273_v6, 4 }
  0xe4   : > { %v1281_v15 = vsel %vm1216_vm8, %v1215_v63, 0.0  ;;  %v1224_v16 = vrot.slane %v1223_v8, 1  ;;  %v1241_v17 = vadd.f32 %v1240_v9, %v1239_v1  ;;  %v1250_v18 = vadd.f32 %v1249_v10, %v1248_v2 }
  0xe5   : > { %v1258_v19 = vrot.slane %v1257_v11, 2  ;;  %v1233_v20 = vrot.slane %v1232_v12, 1  ;;  %v1267_v21 = vrot.slane %v1266_v13, 2  ;;  %v1275_v22 = vadd.f32 %v1274_v14, %v1273_v6 }
  0xe6   : > { %v1282_v23 = vadd.f32 %v1281_v15, %v1280_v7  ;;  %v1225_v24 = vadd.f32 %v1224_v16, %v1223_v8  ;;  %v1242_v25 = vrot.slane %v1241_v17, 1  ;;  %v1251_v26 = vrot.slane %v1250_v18, 1 }
  0xe7   : > { %v1259_v27 = vadd.f32 %v1258_v19, %v1257_v11  ;;  %v1234_v28 = vadd.f32 %v1233_v20, %v1232_v12  ;;  %v1268_v29 = vadd.f32 %v1267_v21, %v1266_v13  ;;  %v1276_v30 = vrot.slane %v1275_v22, 2 }
  0xe8   : > { %v1283_v31 = vrot.slane %v1282_v23, 4  ;;  %v1243_v32 = vadd.f32 %v1242_v25, %v1241_v17  ;;  %v1252_v33 = vadd.f32 %v1251_v26, %v1250_v18  ;;  %vm1303_vm12 = vcmask 1044484  }
  0xe9   : > { %v1260_v34 = vrot.slane %v1259_v27, 1  ;;  %v1269_v35 = vrot.slane %v1268_v29, 1  ;;  %v1277_v36 = vadd.f32 %v1276_v30, %v1275_v22  ;;  %v1298_v38 = vsel %vm1297_vm9, %v1234_v28, %v1225_v24 }
  0xea   : > { %v1284_v37 = vadd.f32 %v1283_v31, %v1282_v23  ;;  %v1300_v40 = vsel %vm1299_vm10, %v1243_v32, %v1298_v38  ;;  %vm1305_vm13 = vcmask 1045509   ;;  %vm1307_vm14 = vcmask 1046534  }
  0xeb   : > { %v1261_v39 = vadd.f32 %v1260_v34, %v1259_v27  ;;  %v1270_v41 = vadd.f32 %v1269_v35, %v1268_v29  ;;  %v1278_v42 = vrot.slane %v1277_v36, 1  ;;  %v1302_v44 = vsel %vm1301_vm11, %v1252_v33, %v1300_v40 }
  0xec   : > { %v1285_v43 = vrot.slane %v1284_v37, 2  ;;  %vm1309_vm15 = vcmask 1047559  }
  0xed   : > { %v1304_v45 = vsel %vm1303_vm12, %v1261_v39, %v1302_v44  ;;  %v1279_v46 = vadd.f32 %v1278_v42, %v1277_v36 }
  0xee   : > { %v1286_v47 = vadd.f32 %v1285_v43, %v1284_v37  ;;  %v1306_v48 = vsel %vm1305_vm13, %v1270_v41, %v1304_v45 }
  0xef   : > { %v1308_v50 = vsel %vm1307_vm14, %v1279_v46, %v1306_v48 }
  0xf0   : > { %v1287_v49 = vrot.slane %v1286_v47, 1 }
  0xf2   : > { %v1288_v52 = vadd.f32 %v1287_v49, %v1286_v47 }
  0xf4   : > { %v1310_v53 = vsel %vm1309_vm15, %v1288_v52, %v1308_v50 }
  0xf5   : > { %v1312_v54 = vadd.f32 %v1310_v53, %v1199_v51 }
  0xf7   : > { %1313 = vst.msk [vmem:[#allocation2] sm:$0xff] %vm1216_vm8, %v1312_v54 }
  0xf8 PF: > { %p2430_p1 = scmp.ne.s32.totalorder %s2958_s28, 2 }
  0xf9   : > { %v1334_v55 = vlaneseq (!%p2430_p1)  ;;  %v1318_v56 = vld [vmem:[%s3394_s17] sm:$0xff] (!%p2430_p1)  ;;  %v1320_v57 = vld [vmem:[%s3394_s17 + $0x10] sm:$0xff] (!%p2430_p1)  ;;  %vm1356_vm1 = vcmask (!%p2430_p1), 261120   ;;  %vm1437_vm2 = vcmask (!%p2430_p1), 1041409   ;;  %vm1439_vm3 = vcmask (!%p2430_p1), 1042434  }
  0xfa   : > { %1317 = sbr.rel (%p2430_p1) target bundleno = 279 (0x117), region = 244  ;;  %v1322_v58 = vld [vmem:[%s3394_s17 + $0x20] sm:$0xff] (!%p2430_p1)  ;;  %v1324_v59 = vld [vmem:[%s3394_s17 + $0x30] sm:$0xff] (!%p2430_p1)  ;;  %vm1441_vm4 = vcmask (!%p2430_p1), 1043459   ;;  %vm1443_vm5 = vcmask (!%p2430_p1), 1044484   ;;  %vm1445_vm6 = vcmask (!%p2430_p1), 1045509  }
  0xfb   : > { %v1326_v60 = vld [vmem:[%s3394_s17 + $0x40] sm:$0xff] (!%p2430_p1)  ;;  %v1335_v61 = vshrl.u32 (!%p2430_p1), %v1334_v55, 7  ;;  %v1328_v62 = vld [vmem:[%s3394_s17 + $0x50] sm:$0xff] (!%p2430_p1)  ;;  %vm1447_vm7 = vcmask (!%p2430_p1), 1046534   ;;  %vm1449_vm8 = vcmask (!%p2430_p1), 1047559  }
  0xfc   : > { %v1330_v63 = vld [vmem:[%s3394_s17 + $0x60] sm:$0xff] (!%p2430_p1)  ;;  %v1332_v0 = vld [vmem:[%s3394_s17 + $0x70] sm:$0xff] (!%p2430_p1) }
  0xfd   : > { %vm1337_vm0 = vcmp.lt.s32.totalorder (!%p2430_p1), %v1335_v61, 4 }
  0xfe   : > { %v1339_v1 = vsel (!%p2430_p1), %vm1337_vm0, %v1318_v56, 0.0  ;;  %v1341_v2 = vsel (!%p2430_p1), %vm1337_vm0, %v1320_v57, 0.0  ;;  %v1343_v3 = vsel (!%p2430_p1), %vm1337_vm0, %v1322_v58, 0.0  ;;  %v1345_v4 = vsel (!%p2430_p1), %vm1337_vm0, %v1324_v59, 0.0 }
  0xff   : > { %v1347_v5 = vsel (!%p2430_p1), %vm1337_vm0, %v1326_v60, 0.0  ;;  %v1349_v6 = vsel (!%p2430_p1), %vm1337_vm0, %v1328_v62, 0.0  ;;  %v1351_v7 = vsel (!%p2430_p1), %vm1337_vm0, %v1330_v63, 0.0  ;;  %v1353_v8 = vsel (!%p2430_p1), %vm1337_vm0, %v1332_v0, 0.0 }
 0x100   : > { %v1357_v9 = vsel (!%p2430_p1), %vm1356_vm1, %v1339_v1, 0.0  ;;  %v1366_v10 = vsel (!%p2430_p1), %vm1356_vm1, %v1341_v2, 0.0  ;;  %v1375_v11 = vsel (!%p2430_p1), %vm1356_vm1, %v1343_v3, 0.0  ;;  %v1384_v12 = vsel (!%p2430_p1), %vm1356_vm1, %v1345_v4, 0.0 }
 0x101   : > { %v1360_v13 = vrot.slane %v1357_v9, 4  ;;  %v1369_v14 = vrot.slane %v1366_v10, 4  ;;  %v1378_v15 = vrot.slane %v1375_v11, 4  ;;  %v1387_v16 = vrot.slane %v1384_v12, 4 }
 0x102   : > { %v1393_v17 = vsel %vm1356_vm1, %v1347_v5, 0.0  ;;  %v1402_v18 = vsel %vm1356_vm1, %v1349_v6, 0.0  ;;  %v1411_v19 = vsel %vm1356_vm1, %v1351_v7, 0.0  ;;  %v1420_v20 = vsel %vm1356_vm1, %v1353_v8, 0.0  ;;  %v1355_v5 = vld [vmem:[#allocation2] sm:$0xff] }
 0x103   : > { %v1361_v21 = vadd.f32 %v1360_v13, %v1357_v9  ;;  %v1370_v22 = vadd.f32 %v1369_v14, %v1366_v10  ;;  %v1379_v23 = vadd.f32 %v1378_v15, %v1375_v11  ;;  %v1388_v24 = vadd.f32 %v1387_v16, %v1384_v12 }
 0x104   : > { %v1396_v25 = vrot.slane %v1393_v17, 4  ;;  %v1405_v26 = vrot.slane %v1402_v18, 4  ;;  %v1414_v27 = vrot.slane %v1411_v19, 4  ;;  %v1423_v28 = vrot.slane %v1420_v20, 4 }
 0x105   : > { %v1362_v29 = vrot.slane %v1361_v21, 2  ;;  %v1371_v30 = vrot.slane %v1370_v22, 2  ;;  %v1380_v31 = vrot.slane %v1379_v23, 2  ;;  %v1389_v32 = vrot.slane %v1388_v24, 2 }
 0x106   : > { %v1397_v33 = vadd.f32 %v1396_v25, %v1393_v17  ;;  %v1406_v34 = vadd.f32 %v1405_v26, %v1402_v18  ;;  %v1415_v35 = vadd.f32 %v1414_v27, %v1411_v19  ;;  %v1424_v36 = vadd.f32 %v1423_v28, %v1420_v20 }
 0x107   : > { %v1363_v37 = vadd.f32 %v1362_v29, %v1361_v21  ;;  %v1372_v38 = vadd.f32 %v1371_v30, %v1370_v22  ;;  %v1381_v39 = vadd.f32 %v1380_v31, %v1379_v23  ;;  %v1390_v40 = vadd.f32 %v1389_v32, %v1388_v24 }
 0x108   : > { %v1398_v41 = vrot.slane %v1397_v33, 2  ;;  %v1407_v42 = vrot.slane %v1406_v34, 2  ;;  %v1416_v43 = vrot.slane %v1415_v35, 2  ;;  %v1425_v44 = vrot.slane %v1424_v36, 2 }
 0x109   : > { %v1364_v45 = vrot.slane %v1363_v37, 1  ;;  %v1373_v46 = vrot.slane %v1372_v38, 1  ;;  %v1382_v47 = vrot.slane %v1381_v39, 1  ;;  %v1391_v48 = vrot.slane %v1390_v40, 1 }
 0x10a   : > { %v1399_v49 = vadd.f32 %v1398_v41, %v1397_v33  ;;  %v1408_v50 = vadd.f32 %v1407_v42, %v1406_v34  ;;  %v1417_v51 = vadd.f32 %v1416_v43, %v1415_v35  ;;  %v1426_v52 = vadd.f32 %v1425_v44, %v1424_v36 }
 0x10b   : > { %v1365_v53 = vadd.f32 %v1364_v45, %v1363_v37  ;;  %v1374_v54 = vadd.f32 %v1373_v46, %v1372_v38  ;;  %v1383_v55 = vadd.f32 %v1382_v47, %v1381_v39  ;;  %v1392_v56 = vadd.f32 %v1391_v48, %v1390_v40 }
 0x10c   : > { %v1400_v57 = vrot.slane %v1399_v49, 1  ;;  %v1409_v58 = vrot.slane %v1408_v50, 1  ;;  %v1418_v59 = vrot.slane %v1417_v51, 1  ;;  %v1427_v60 = vrot.slane %v1426_v52, 1 }
 0x10d   : > { %v1438_v61 = vsel %vm1437_vm2, %v1374_v54, %v1365_v53 }
 0x10e   : > { %v1401_v62 = vadd.f32 %v1400_v57, %v1399_v49  ;;  %v1410_v63 = vadd.f32 %v1409_v58, %v1408_v50  ;;  %v1419_v0 = vadd.f32 %v1418_v59, %v1417_v51  ;;  %v1440_v1 = vsel %vm1439_vm3, %v1383_v55, %v1438_v61 }
 0x10f   : > { %v1428_v2 = vadd.f32 %v1427_v60, %v1426_v52  ;;  %v1442_v3 = vsel %vm1441_vm4, %v1392_v56, %v1440_v1 }
 0x110   : > { %v1444_v4 = vsel %vm1443_vm5, %v1401_v62, %v1442_v3 }
 0x111   : > { %v1446_v6 = vsel %vm1445_vm6, %v1410_v63, %v1444_v4 }
 0x112   : > { %v1448_v7 = vsel %vm1447_vm7, %v1419_v0, %v1446_v6 }
 0x113   : > { %v1450_v8 = vsel %vm1449_vm8, %v1428_v2, %v1448_v7 }
 0x114   : > { %v1452_v9 = vadd.f32 %v1450_v8, %v1355_v5 }
 0x116   : > { %1453 = vst.msk [vmem:[#allocation2] sm:$0xff] %vm1356_vm1, %v1452_v9 }
 0x117 PF: > { %p1454_p5 = scmp.ge.s32.totalorder %s2958_s28, 3  ;;  %p1455_p6 = scmp.lt.s32.totalorder %s2958_s28, 5 }
 0x119   : > { %p1456_p7 = pnand %p1455_p6, %p1454_p5 }
 0x11a   : > { %v1461_v10 = vld [vmem:[%s3396_s9] sm:$0xff] (!%p1456_p7)  ;;  %v1462_v11 = vld [vmem:[%s3396_s9 + $0x8] sm:$0xff] (!%p1456_p7)  ;;  %vm1477_vm9 = vcmask (!%p1456_p7), 261120   ;;  %v1463_v12 = vld [vmem:[%s3396_s9 + $0x10] sm:$0xff] (!%p1456_p7)  ;;  %vm1558_vm10 = vcmask (!%p1456_p7), 1041409   ;;  %vm1560_vm11 = vcmask (!%p1456_p7), 1042434  }
 0x11b   : > { %1459 = sbr.rel (%p1456_p7) target bundleno = 314 (0x13a), region = 248  ;;  %v1464_v13 = vld [vmem:[%s3396_s9 + $0x18] sm:$0xff] (!%p1456_p7)  ;;  %v1465_v14 = vld [vmem:[%s3396_s9 + $0x20] sm:$0xff] (!%p1456_p7)  ;;  %v1478_v15 = vsel (!%p1456_p7), %vm1477_vm9, %v1461_v10, 0.0  ;;  %v1479_v16 = vsel (!%p1456_p7), %vm1477_vm9, %v1462_v11, 0.0  ;;  %v1466_v17 = vld [vmem:[%s3396_s9 + $0x28] sm:$0xff] (!%p1456_p7) }
 0x11c   : > { %v1467_v18 = vld [vmem:[%s3396_s9 + $0x30] sm:$0xff] (!%p1456_p7)  ;;  %v1468_v19 = vld [vmem:[%s3396_s9 + $0x38] sm:$0xff] (!%p1456_p7)  ;;  %v1480_v20 = vadd.f32 (!%p1456_p7), %v1479_v16, %v1478_v15  ;;  %v1487_v21 = vsel (!%p1456_p7), %vm1477_vm9, %v1463_v12, 0.0  ;;  %v1488_v22 = vsel (!%p1456_p7), %vm1477_vm9, %v1464_v13, 0.0  ;;  %v1496_v23 = vsel (!%p1456_p7), %vm1477_vm9, %v1465_v14, 0.0  ;;  %v1469_v24 = vld [vmem:[%s3396_s9 + $0x40] sm:$0xff] (!%p1456_p7) }
 0x11d   : > { %v1470_v25 = vld [vmem:[%s3396_s9 + $0x48] sm:$0xff] (!%p1456_p7)  ;;  %v1471_v26 = vld [vmem:[%s3396_s9 + $0x50] sm:$0xff] (!%p1456_p7)  ;;  %v1489_v27 = vadd.f32 (!%p1456_p7), %v1488_v22, %v1487_v21  ;;  %v1497_v28 = vsel (!%p1456_p7), %vm1477_vm9, %v1466_v17, 0.0  ;;  %v1505_v29 = vsel (!%p1456_p7), %vm1477_vm9, %v1467_v18, 0.0  ;;  %v1506_v30 = vsel (!%p1456_p7), %vm1477_vm9, %v1468_v19, 0.0  ;;  %v1472_v31 = vld [vmem:[%s3396_s9 + $0x58] sm:$0xff] (!%p1456_p7) }
 0x11e   : > { %v1473_v32 = vld [vmem:[%s3396_s9 + $0x60] sm:$0xff] (!%p1456_p7)  ;;  %v1474_v33 = vld [vmem:[%s3396_s9 + $0x68] sm:$0xff] (!%p1456_p7)  ;;  %v1481_v34 = vrot.slane (!%p1456_p7), %v1480_v20, 4  ;;  %v1498_v35 = vadd.f32 (!%p1456_p7), %v1497_v28, %v1496_v23  ;;  %v1507_v36 = vadd.f32 (!%p1456_p7), %v1506_v30, %v1505_v29  ;;  %v1514_v37 = vsel (!%p1456_p7), %vm1477_vm9, %v1469_v24, 0.0  ;;  %v1475_v42 = vld [vmem:[%s3396_s9 + $0x70] sm:$0xff] (!%p1456_p7) }
 0x11f   : > { %v1490_v38 = vrot.slane (!%p1456_p7), %v1489_v27, 4  ;;  %v1515_v39 = vsel (!%p1456_p7), %vm1477_vm9, %v1470_v25, 0.0  ;;  %v1523_v40 = vsel (!%p1456_p7), %vm1477_vm9, %v1471_v26, 0.0  ;;  %v1524_v41 = vsel (!%p1456_p7), %vm1477_vm9, %v1472_v31, 0.0  ;;  %v1476_v51 = vld [vmem:[%s3396_s9 + $0x78] sm:$0xff] (!%p1456_p7) }
 0x120   : > { %v1482_v43 = vadd.f32 (!%p1456_p7), %v1481_v34, %v1480_v20  ;;  %v1499_v44 = vrot.slane (!%p1456_p7), %v1498_v35, 4  ;;  %v1508_v45 = vrot.slane (!%p1456_p7), %v1507_v36, 4  ;;  %v1516_v46 = vadd.f32 (!%p1456_p7), %v1515_v39, %v1514_v37  ;;  %v1460_v39 = vld [vmem:[#allocation2] sm:$0xff] (!%p1456_p7) }
 0x121   : > { %v1491_v47 = vadd.f32 (!%p1456_p7), %v1490_v38, %v1489_v27  ;;  %v1525_v48 = vadd.f32 (!%p1456_p7), %v1524_v41, %v1523_v40  ;;  %v1532_v49 = vsel (!%p1456_p7), %vm1477_vm9, %v1473_v32, 0.0  ;;  %v1533_v50 = vsel (!%p1456_p7), %vm1477_vm9, %v1474_v33, 0.0 }
 0x122   : > { %v1483_v52 = vrot.slane %v1482_v43, 2  ;;  %v1500_v53 = vadd.f32 %v1499_v44, %v1498_v35  ;;  %v1509_v54 = vadd.f32 %v1508_v45, %v1507_v36  ;;  %v1517_v55 = vrot.slane %v1516_v46, 4 }
 0x123   : > { %vm1562_vm12 = vcmask 1043459   ;;  %v1492_v56 = vrot.slane %v1491_v47, 2  ;;  %v1526_v57 = vrot.slane %v1525_v48, 4  ;;  %v1534_v58 = vadd.f32 %v1533_v50, %v1532_v49 }
 0x124   : > { %v1541_v59 = vsel %vm1477_vm9, %v1475_v42, 0.0  ;;  %v1484_v60 = vadd.f32 %v1483_v52, %v1482_v43  ;;  %v1501_v61 = vrot.slane %v1500_v53, 2  ;;  %v1510_v62 = vrot.slane %v1509_v54, 2 }
 0x125   : > { %v1518_v63 = vadd.f32 %v1517_v55, %v1516_v46  ;;  %v1493_v0 = vadd.f32 %v1492_v56, %v1491_v47  ;;  %v1527_v1 = vadd.f32 %v1526_v57, %v1525_v48  ;;  %v1535_v2 = vrot.slane %v1534_v58, 4 }
 0x126   : > { %v1542_v3 = vsel %vm1477_vm9, %v1476_v51, 0.0  ;;  %v1485_v4 = vrot.slane %v1484_v60, 1  ;;  %v1502_v5 = vadd.f32 %v1501_v61, %v1500_v53  ;;  %v1511_v6 = vadd.f32 %v1510_v62, %v1509_v54 }
 0x127   : > { %v1519_v7 = vrot.slane %v1518_v63, 2  ;;  %v1494_v8 = vrot.slane %v1493_v0, 1  ;;  %v1528_v9 = vrot.slane %v1527_v1, 2  ;;  %v1536_v10 = vadd.f32 %v1535_v2, %v1534_v58 }
 0x128   : > { %v1543_v11 = vadd.f32 %v1542_v3, %v1541_v59  ;;  %v1486_v12 = vadd.f32 %v1485_v4, %v1484_v60  ;;  %v1503_v13 = vrot.slane %v1502_v5, 1  ;;  %v1512_v14 = vrot.slane %v1511_v6, 1 }
 0x129   : > { %v1520_v15 = vadd.f32 %v1519_v7, %v1518_v63  ;;  %v1495_v16 = vadd.f32 %v1494_v8, %v1493_v0  ;;  %v1529_v17 = vadd.f32 %v1528_v9, %v1527_v1  ;;  %v1537_v18 = vrot.slane %v1536_v10, 2 }
 0x12a   : > { %v1544_v19 = vrot.slane %v1543_v11, 4  ;;  %v1504_v20 = vadd.f32 %v1503_v13, %v1502_v5  ;;  %v1513_v21 = vadd.f32 %v1512_v14, %v1511_v6  ;;  %vm1564_vm13 = vcmask 1044484  }
 0x12b   : > { %v1521_v22 = vrot.slane %v1520_v15, 1  ;;  %v1530_v23 = vrot.slane %v1529_v17, 1  ;;  %v1538_v24 = vadd.f32 %v1537_v18, %v1536_v10  ;;  %v1559_v26 = vsel %vm1558_vm10, %v1495_v16, %v1486_v12 }
 0x12c   : > { %v1545_v25 = vadd.f32 %v1544_v19, %v1543_v11  ;;  %v1561_v28 = vsel %vm1560_vm11, %v1504_v20, %v1559_v26  ;;  %vm1566_vm14 = vcmask 1045509   ;;  %vm1568_vm15 = vcmask 1046534  }
 0x12d   : > { %v1522_v27 = vadd.f32 %v1521_v22, %v1520_v15  ;;  %v1531_v29 = vadd.f32 %v1530_v23, %v1529_v17  ;;  %v1539_v30 = vrot.slane %v1538_v24, 1  ;;  %v1563_v32 = vsel %vm1562_vm12, %v1513_v21, %v1561_v28 }
 0x12e   : > { %v1546_v31 = vrot.slane %v1545_v25, 2  ;;  %vm1570_vm0 = vcmask 1047559  }
 0x12f   : > { %v1565_v33 = vsel %vm1564_vm13, %v1522_v27, %v1563_v32  ;;  %v1540_v34 = vadd.f32 %v1539_v30, %v1538_v24 }
 0x130   : > { %v1547_v35 = vadd.f32 %v1546_v31, %v1545_v25  ;;  %v1567_v36 = vsel %vm1566_vm14, %v1531_v29, %v1565_v33 }
 0x131   : > { %v1569_v38 = vsel %vm1568_vm15, %v1540_v34, %v1567_v36 }
 0x132   : > { %v1548_v37 = vrot.slane %v1547_v35, 1 }
 0x134   : > { %v1549_v40 = vadd.f32 %v1548_v37, %v1547_v35 }
 0x136   : > { %v1571_v41 = vsel %vm1570_vm0, %v1549_v40, %v1569_v38 }
 0x137   : > { %v1573_v42 = vadd.f32 %v1571_v41, %v1460_v39 }
 0x139   : > { %1574 = vst.msk [vmem:[#allocation2] sm:$0xff] %vm1477_vm9, %v1573_v42 }
 0x13a PF: > { %p2431_p8 = scmp.ne.s32.totalorder %s2958_s28, 5 }
 0x13b   : > { %v1717_v43 = vld [vmem:[%s3616_s3] sm:$0xff] (!%p2431_p8)  ;;  %v1718_v44 = vld [vmem:[%s3616_s3 + $0x8] sm:$0xff] (!%p2431_p8)  ;;  %v1719_v45 = vld [vmem:[%s3616_s3 + $0x10] sm:$0xff] (!%p2431_p8)  ;;  %v3065_v46 = vmov (!%p2431_p8), 0.0|0.0   ;;  %vm3066_vm1 = vmmov (!%p2431_p8), 0   ;;  %v3067_v49 = vmov (!%p2431_p8), 0.0  }
 0x13c   : > { %1578 = sbr.rel (%p2431_p8) target bundleno = 781 (0x30d), region = 252  ;;  %2502 = vmatprep.subr.bf16.mxu0 (!%p2431_p8), %v3065_v46  ;;  %v2503_v47 = vpack.c.bf16 (!%p2431_p8), %v1718_v44, %v1717_v43  ;;  %v1720_v48 = vld [vmem:[%s3616_s3 + $0x18] sm:$0xff] (!%p2431_p8)  ;;  %2480 = vmatprep.mubr.msk.f32.mxu0 (!%p2431_p8), %vm3066_vm1, %v3067_v49  ;;  %v1579_v50 = vld [vmem:[%s3396_s9] sm:$0xff] (!%p2431_p8)  ;;  %vm1617_vm2 = vcmask (!%p2431_p8), 261120   ;;  %vm1698_vm3 = vcmask (!%p2431_p8), 1041409   ;;  %vm1700_vm4 = vcmask (!%p2431_p8), 1042434  }
 0x13d   : > { %v1581_v51 = vld [vmem:[%s3396_s9 + $0x10] sm:$0xff] (!%p2431_p8)  ;;  %v1583_v52 = vld [vmem:[%s3396_s9 + $0x20] sm:$0xff] (!%p2431_p8)  ;;  %v1618_v55 = vsel (!%p2431_p8), %vm1617_vm2, %v1579_v50, 0.0  ;;  %2508 = vmatprep.subr.bf16.mxu1 (!%p2431_p8), %v3065_v46  ;;  %2499 = vmatprep.mubr.msk.f32.mxu1 (!%p2431_p8), %vm3066_vm1, %v3067_v49  ;;  %v2506_v57 = vpack.c.bf16 (!%p2431_p8), %v1720_v48, %v1719_v45  ;;  %vm1702_vm5 = vcmask (!%p2431_p8), 1043459   ;;  %vm1704_vm6 = vcmask (!%p2431_p8), 1044484   ;;  %v1802_v48 = vld [vmem:[%s3618_s5] sm:$0xff] (!%p2431_p8) }
 0x13e   : > { %v1585_v53 = vld [vmem:[%s3396_s9 + $0x30] sm:$0xff] (!%p2431_p8)  ;;  %v1587_v54 = vld [vmem:[%s3396_s9 + $0x40] sm:$0xff] (!%p2431_p8)  ;;  %v1627_v56 = vsel (!%p2431_p8), %vm1617_vm2, %v1581_v51, 0.0  ;;  %2504 = vmatpush3.bf16.msra.mxu0 (!%p2431_p8), %v2503_v47  ;;  %v1621_v61 = vrot.slane (!%p2431_p8), %v1618_v55, 4  ;;  %v1636_v63 = vsel (!%p2431_p8), %vm1617_vm2, %v1583_v52, 0.0  ;;  %vm1706_vm7 = vcmask (!%p2431_p8), 1045509  }
 0x13f   : > { %v1589_v58 = vld [vmem:[%s3396_s9 + $0x50] sm:$0xff] (!%p2431_p8)  ;;  %v1591_v59 = vld [vmem:[%s3396_s9 + $0x60] sm:$0xff] (!%p2431_p8)  ;;  %v1630_v62 = vrot.slane (!%p2431_p8), %v1627_v56, 4  ;;  %2505 = vmatprep.subr.bf16.mxu0 (!%p2431_p8), %v3065_v46  ;;  %v1639_v0 = vrot.slane (!%p2431_p8), %v1636_v63, 4  ;;  %v1645_v1 = vsel (!%p2431_p8), %vm1617_vm2, %v1585_v53, 0.0  ;;  %v1654_v2 = vsel (!%p2431_p8), %vm1617_vm2, %v1587_v54, 0.0 }
 0x140   : > { %v1593_v60 = vld [vmem:[%s3396_s9 + $0x70] sm:$0xff] (!%p2431_p8)  ;;  %v1663_v3 = vsel (!%p2431_p8), %vm1617_vm2, %v1589_v58, 0.0  ;;  %v1622_v4 = vadd.f32 (!%p2431_p8), %v1621_v61, %v1618_v55  ;;  %v1648_v6 = vrot.slane (!%p2431_p8), %v1645_v1, 4  ;;  %v1657_v7 = vrot.slane (!%p2431_p8), %v1654_v2, 4  ;;  %v1803_v49 = vld [vmem:[%s3618_s5 + $0x8] sm:$0xff] (!%p2431_p8)  ;;  %v1804_v55 = vld [vmem:[%s3618_s5 + $0x10] sm:$0xff] (!%p2431_p8) }
 0x141   : > { %v1631_v5 = vadd.f32 (!%p2431_p8), %v1630_v62, %v1627_v56  ;;  %v1640_v8 = vadd.f32 (!%p2431_p8), %v1639_v0, %v1636_v63  ;;  %v1666_v9 = vrot.slane (!%p2431_p8), %v1663_v3, 4  ;;  %v1672_v10 = vsel (!%p2431_p8), %vm1617_vm2, %v1591_v59, 0.0  ;;  %v1805_v56 = vld [vmem:[%s3618_s5 + $0x18] sm:$0xff] (!%p2431_p8)  ;;  %v1616_v61 = vld [vmem:[#allocation2] sm:$0xff] (!%p2431_p8) }
 0x142   : > { %v1681_v11 = vsel (!%p2431_p8), %vm1617_vm2, %v1593_v60, 0.0  ;;  %2507 = vmatpush3.bf16.msra.mxu0 (!%p2431_p8), %v2506_v57  ;;  %v1623_v12 = vrot.slane (!%p2431_p8), %v1622_v4, 2  ;;  %v1649_v14 = vadd.f32 (!%p2431_p8), %v1648_v6, %v1645_v1  ;;  %v1658_v15 = vadd.f32 (!%p2431_p8), %v1657_v7, %v1654_v2  ;;  %v1806_v2 = vld [vmem:[%s3618_s5 + $0x20] sm:$0xff] (!%p2431_p8) }
 0x143   : > { %v1632_v13 = vrot.slane %v1631_v5, 2  ;;  %v1641_v16 = vrot.slane %v1640_v8, 2  ;;  %v1667_v17 = vadd.f32 %v1666_v9, %v1663_v3  ;;  %v1675_v18 = vrot.slane %v1672_v10, 4  ;;  %v1807_v3 = vld [vmem:[%s3618_s5 + $0x28] sm:$0xff]  ;;  %v1809_v9 = vld [vmem:[%s3618_s5 + $0x38] sm:$0xff] }
 0x144   : > { %v1684_v19 = vrot.slane %v1681_v11, 4  ;;  %v1624_v20 = vadd.f32 %v1623_v12, %v1622_v4  ;;  %v1650_v22 = vrot.slane %v1649_v14, 2  ;;  %v1659_v23 = vrot.slane %v1658_v15, 2 }
 0x145   : > { %v1633_v21 = vadd.f32 %v1632_v13, %v1631_v5  ;;  %v1642_v24 = vadd.f32 %v1641_v16, %v1640_v8  ;;  %v1668_v25 = vrot.slane %v1667_v17, 2  ;;  %v1676_v26 = vadd.f32 %v1675_v18, %v1672_v10  ;;  %v1808_v8 = vld [vmem:[%s3618_s5 + $0x30] sm:$0xff] }
 0x146   : > { %v1685_v27 = vadd.f32 %v1684_v19, %v1681_v11  ;;  %v1625_v28 = vrot.slane %v1624_v20, 1  ;;  %v1651_v30 = vadd.f32 %v1650_v22, %v1649_v14  ;;  %v1660_v31 = vadd.f32 %v1659_v23, %v1658_v15  ;;  %v2432_v11 = vld [vmem:[%s3617_s4] ss:$0 sm:$0xff] }
 0x147   : > { %v1634_v29 = vrot.slane %v1633_v21, 1  ;;  %v1643_v32 = vrot.slane %v1642_v24, 1  ;;  %v1669_v33 = vadd.f32 %v1668_v25, %v1667_v17  ;;  %v1677_v34 = vrot.slane %v1676_v26, 2  ;;  %v2434_v15 = vld [vmem:[%s3619_s6] ss:$0 sm:$0xff] }
 0x148   : > { %v1686_v35 = vrot.slane %v1685_v27, 2  ;;  %v1626_v36 = vadd.f32 %v1625_v28, %v1624_v20  ;;  %v1652_v38 = vrot.slane %v1651_v30, 1  ;;  %v1661_v39 = vrot.slane %v1660_v31, 1 }
 0x149   : > { %v1635_v37 = vadd.f32 %v1634_v29, %v1633_v21  ;;  %v1644_v40 = vadd.f32 %v1643_v32, %v1642_v24  ;;  %v1670_v41 = vrot.slane %v1669_v33, 1  ;;  %v1678_v42 = vadd.f32 %v1677_v34, %v1676_v26 }
 0x14a   : > { %v1687_v43 = vadd.f32 %v1686_v35, %v1685_v27  ;;  %v1653_v44 = vadd.f32 %v1652_v38, %v1651_v30  ;;  %v1662_v45 = vadd.f32 %v1661_v39, %v1660_v31  ;;  %vm1708_vm8 = vcmask 1046534  }
 0x14b   : > { %v1699_v47 = vsel %vm1698_vm3, %v1635_v37, %v1626_v36  ;;  %v1671_v50 = vadd.f32 %v1670_v41, %v1669_v33  ;;  %v1679_v51 = vrot.slane %v1678_v42, 1  ;;  %vm1710_vm9 = vcmask 1047559  }
 0x14c   : > { %v1688_v52 = vrot.slane %v1687_v43, 1  ;;  %v1701_v53 = vsel %vm1700_vm4, %v1644_v40, %v1699_v47  ;;  %v2509_v60 = vpack.c.bf16 %v1803_v49, %v1802_v48  ;;  %v2512_v0 = vpack.c.bf16 %v1805_v56, %v1804_v55 }
 0x14d   : > { %v1703_v54 = vsel %vm1702_vm5, %v1653_v44, %v1701_v53  ;;  %v1680_v57 = vadd.f32 %v1679_v51, %v1678_v42  ;;  %v2515_v5 = vpack.c.bf16 %v1807_v3, %v1806_v2  ;;  %v2518_v10 = vpack.c.bf16 %v1809_v9, %v1808_v8 }
 0x14e   : > { %v1689_v58 = vadd.f32 %v1688_v52, %v1687_v43  ;;  %v1705_v59 = vsel %vm1704_vm6, %v1662_v45, %v1703_v54  ;;  %2510 = vmatpush3.bf16.msra.mxu1 %v2509_v60  ;;  %vm1817_vm10 = vcmask 523264   ;;  %vm1891_vm11 = vcmask 130048  }
 0x14f   : > { %v1707_v62 = vsel %vm1706_vm7, %v1671_v50, %v1705_v59  ;;  %2511 = vmatprep.subr.bf16.mxu1 %v3065_v46 }
 0x150   : > { %v1709_v63 = vsel %vm1708_vm8, %v1680_v57, %v1707_v62 }
 0x151   : > { %v1711_v1 = vsel %vm1710_vm9, %v1689_v58, %v1709_v63 }
 0x152   : > { %v1713_v4 = vadd.f32 %v1711_v1, %v1616_v61  ;;  %2513 = vmatpush3.bf16.msra.mxu1 %v2512_v0 }
 0x153   : > { %2514 = vmatprep.subr.bf16.mxu1 %v3065_v46 }
 0x154   : > { %1714 = vst.msk [vmem:[#allocation2] sm:$0xff] %vm1617_vm2, %v1713_v4 }
 0x156   : > { %2516 = vmatpush3.bf16.msra.mxu1 %v2515_v5 }
 0x157   : > { %2517 = vmatprep.subr.bf16.mxu1 %v3065_v46 }
 0x15a   : > { %2519 = vmatpush3.bf16.msra.mxu1 %v2518_v10 }
 0x15b   : > { %v1715_v6 = vld [vmem:[#allocation2] sm:$0xff] }
 0x15c   : > { %v1716_v7 = vmul.f32 0.014705882, %v1715_v6 }
 0x15e   : > { %2481 = vmatmul.mubr.msk.f32.vlgmr.msra.gmra.mrb[0].mxu0 %vm1617_vm2, %v1716_v7 }
 0x231   : > { %v1797_v12 = vpop.f32.mrb[0].mxu0 }
 0x232   : > { %v1798_v46 = vadd.f32 %v2432_v11, %v1797_v12  ;;  %v2482_v13 = vpop.f32.mrb[1].mxu0 }
 0x234   : > { %v1801_v14 = vmax.f32 %v1798_v46, 0.0 }
 0x236   : > { %2500 = vmatmul.mubr.msk.f32.vlgmr.msra.gmra.mrb[0].mxu1 %vm1817_vm10, %v1801_v14 }
 0x309   : > { %v1887_v16 = vpop.f32.mrb[0].mxu1 }
 0x30a   : > { %v1888_v17 = vadd.f32 %v2434_v15, %v1887_v16  ;;  %v2501_v18 = vpop.f32.mrb[1].mxu1 }
 0x30c   : > { %1892 = vst.msk [vmem:[#allocation6] sm:$0xff] %vm1891_vm11, %v1888_v17 }
 0x30d PF: > { %s3651_s28 = sadd.s32 4294967295, %s2966_s30  }
 0x30e   : > { %p2436_p9 = scmp.ne.s32.totalorder %s3651_s28, 5 }
 0x310   : > { %1895 = sbr.rel (%p2436_p9) target bundleno = 810 (0x32a), region = 256 }
 0x317   : > { %1901 = vsyncadd [#allocation7], 96  ;;  %s3068_s27 = smov [#allocation6]  }
 0x318   : > { %s1906_s14 = sshll.u32 %s3068_s27, 4  ;;  %s1907_s14 = int_to_ptr.vmem [resolvable:$true] %s1906_s14 }
 0x319   : > { %s2786_s15 = scalar_lea.vmem %s1907_s14, 32  ;;  %s2790_s18 = scalar_lea.vmem %s1907_s14, 128 }
 0x31a   : > { %p2787_p10 = scmp.ne.s32.totalorder %s1907_s14, %s2786_s15  ;;  %p2791_p11 = scmp.lt.s32.totalorder %s1907_s14, %s1907_s14 }
 0x31b   : > { %p2792_p12 = scmp.lt.s32.totalorder %s2790_s18, %s2786_s15 }
 0x31d   : > { %p2793_p13 = por %p2792_p12, %p2791_p11 }
 0x31f   : > { %p2794_p2 = pnand %p2793_p13, %p2787_p10 }
 0x321   : > { %2797 = shalt.err (!%p2794_p2)
}
 0x322   : > { %s2798_s16 = scalar_lea.hbm %s3620_s7, 32 }
 0x323   : > { %p2799_p3 = scmp.ne.s32.totalorder %s3620_s7, %s2798_s16  ;;  %p2802_p0 = scmp.lt.u32.totalorder %s2798_s16, %s3620_s7 }
 0x325   : > { %p2804_p4 = pnand %p2802_p0, %p2799_p3 }
 0x327   : > { %2807 = shalt.err (!%p2804_p4)
}
 0x328   : > { %s3069_s19 = smov 32   ;;  %s3070_s11 = smov 2  }
 0x329   : > { %1912 = dma.vmem_to_hbm [thread:$0]  %s1907_s14, 32, %s3620_s7, [#allocation7], %s3069_s19, %s3069_s19, %s3070_s11  }
 0x32a PF: > { %s3652_s24 = sadd.s32 4294967295, %s2966_s30  }
 0x32b   : > { %p2522_p1 = scmp.eq.s32.totalorder %s3652_s24, 5 }
 0x32d   : > { %2937 = dma.done.wait (%p2522_p1), [#allocation7], 128  }
 0x32e   : > { %2939 = vsyncadd (%p2522_p1), [#allocation7], 4294967168 }
 0x32f PF: > { %s18_s30 = sadd.s32 1, %s2966_s30   ;;  %s3653_s26 = sld [smem:[#allocation9_spill]] }
 0x330   : > { %p15_p5 = scmp.ge.s32.totalorder %s18_s30, 8   ;;  %s3654_s27 = sld [smem:[#allocation12_spill]] }
 0x331   : > { %s3655_s28 = sld [smem:[#allocation10_spill]]  ;;  %s3656_s29 = sld [smem:[#allocation11_spill]] }
 0x332   : > { %s3657_s24 = smov %s2946_s25  ;;  %s3658_s25 = smov %s3183_s22 }
 0x333   :  { %17 = sbr.rel (!%p15_p5) target bundleno = 7 (0x7), region = 429 }
 0x33a   :  { %1922 = vsyncpa [#allocation7], 1 }
 0x33b   :  { %1924 = vsyncpa [#allocation7 + $0x1], 1 }

</bundles_post_ra>
